<compile_context>
chip_gen: v7x
topology: tpu7x:2x2x1
jax: 0.10.0
libtpu: 0.0.40
codegen_flags: <defaults>
</compile_context>

<pallas_src>
import jax
import jax.numpy as jnp
from jax.experimental import pallas as pl
from jax.experimental.pallas import tpu as pltpu


def pointer_kernel(static_ref, state_ref, dec_ref, tgt_ref, hh_ref,
                   w_ir_ref, w_iz_ref, w_in_ref,
                   w_hr_ref, w_hz_ref, w_hn_ref,
                   b_r_ref, b_z_ref, b_in_ref, b_hn_ref,
                   enc_v_ref, enc_w1_ref, enc_w2_ref,
                   tgt_v_ref, tgt_w1_ref, tgt_w2_ref,
                   ptr_v_ref, ptr_w1_ref, ptr_w2_ref, ptr_w3_ref,
                   probs_ref, hh_out_ref):
    static = static_ref[...]                       # (Bt, S, H)
    Bt, S, H = static.shape
    x = dec_ref[...]                               # (Bt, H)
    h = hh_ref[0]                                  # (Bt, H)   from (1, Bt, H)
    state_emb = state_ref[...]                     # (Bt, H)
    tgt_hid = tgt_ref[...]                         # (Bt, H)

    def mm(a, w_ref):
        return jnp.dot(a, w_ref[...], preferred_element_type=jnp.float32)

    # ---- GRU single step (PyTorch gate order r, z, n), per-gate matmuls ----------
    r = jax.nn.sigmoid(mm(x, w_ir_ref) + mm(h, w_hr_ref) + b_r_ref[...])
    z = jax.nn.sigmoid(mm(x, w_iz_ref) + mm(h, w_hz_ref) + b_z_ref[...])
    n = jnp.tanh(mm(x, w_in_ref) + b_in_ref[...]
                 + r * (mm(h, w_hn_ref) + b_hn_ref[...]))
    h_new = (1.0 - z) * n + z * h                  # (Bt, H) == rnn_out (dropout = identity)

    # Shared-weight matmuls are done on the flattened (Bt*S, H) slab (single MXU call).
    static_2d = static.reshape(Bt * S, H)

    # ---- Attention: softmax_s( v . tanh( W1 @ static + W2 @ query ) ) ------------
    def attention(query, v_ref, w1_ref, w2_ref):
        stat_p = mm(static_2d, w1_ref).reshape(Bt, S, H)
        q_p = mm(query, w2_ref)                    # (Bt, H)
        u = jnp.tanh(stat_p + q_p[:, None, :])     # (Bt, S, H), implicit broadcast
        scores = jnp.sum(u * v_ref[...], axis=-1)  # (Bt, S)  lane reduce
        m = jnp.max(scores, axis=-1, keepdims=True)
        e = jnp.exp(scores - m)
        inv = pl.reciprocal(jnp.sum(e, axis=-1, keepdims=True), approx=False)
        return e * inv                             # (Bt, S)

    # ---- Pointer energy: v . tanh( W1 @ static + W2 @ context + W3 @ state ) -----
    # Static and state projections are hoisted: computed once, used by both branches.
    ptr_static = mm(static_2d, ptr_w1_ref).reshape(Bt, S, H)
    ptr_state = mm(state_emb, ptr_w3_ref)          # (Bt, H)

    def pointer_scores(context):
        q = mm(context, ptr_w2_ref) + ptr_state    # (Bt, H)
        u = jnp.tanh(ptr_static + q[:, None, :])   # (Bt, S, H)
        return jnp.sum(u * ptr_v_ref[...], axis=-1)  # (Bt, S)

    enc_attn = attention(h_new, enc_v_ref, enc_w1_ref, enc_w2_ref)       # (Bt, S)
    context = jnp.sum(enc_attn[:, :, None] * static, axis=1)             # (Bt, H)
    probs_enc = pointer_scores(context)

    tgt_attn = attention(tgt_hid, tgt_v_ref, tgt_w1_ref, tgt_w2_ref)
    context_t = jnp.sum(tgt_attn[:, :, None] * static, axis=1)
    probs_tgt = pointer_scores(context_t)

    probs_ref[...] = 5.0 * probs_enc + probs_tgt   # (Bt, S)  lane-dense output
    hh_out_ref[0] = h_new                          # (Bt, H)  into (1, Bt, H) block


def pointer_forward(params, static_hidden, state_embedding, decoder_hidden,
                    target_hidden, last_hh, *, batch_tile=None):
    B, S, H = static_hidden.shape
    f32 = jnp.float32

    # Batch tile: biggest reasonable MXU-row tile. On v7x pass batch_tile <= B//2 so the
    # grid keeps >= 2 steps (one per TensorCore); keep double-buffered blocks in VMEM.
    if batch_tile is None:
        batch_tile = min(B, 128)
    Bt = batch_tile
    n_steps = pl.cdiv(B, Bt)
    B_pad = n_steps * Bt

    # Squeeze the seq_len=1 / num_layers=1 dims outside the kernel (free reshapes).
    state_2d = state_embedding[:, 0, :]            # (B, H)
    dec_2d = decoder_hidden[:, 0, :]               # (B, H)
    tgt_2d = target_hidden[:, 0, :]                # (B, H)
    static_p, hh_p_in = static_hidden, last_hh

    if B_pad != B:
        pad = B_pad - B
        static_p = jnp.pad(static_p, ((0, pad), (0, 0), (0, 0)))
        state_2d = jnp.pad(state_2d, ((0, pad), (0, 0)))
        dec_2d = jnp.pad(dec_2d, ((0, pad), (0, 0)))
        tgt_2d = jnp.pad(tgt_2d, ((0, pad), (0, 0)))
        hh_p_in = jnp.pad(hh_p_in, ((0, 0), (0, pad), (0, 0)))

    # ---- plain-JAX glue: per-gate GRU split + attention weight splits -------------
    w_ih, w_hh = params["gru_w_ih"], params["gru_w_hh"]        # (3H, H) each, rows r|z|n
    b_ih, b_hh = params["gru_b_ih"], params["gru_b_hh"]        # (3H,) each
    w_ir_t, w_iz_t, w_in_t = w_ih[:H].T, w_ih[H:2 * H].T, w_ih[2 * H:].T
    w_hr_t, w_hz_t, w_hn_t = w_hh[:H].T, w_hh[H:2 * H].T, w_hh[2 * H:].T
    b_r = (b_ih[:H] + b_hh[:H]).reshape(1, H)
    b_z = (b_ih[H:2 * H] + b_hh[H:2 * H]).reshape(1, H)
    b_in = b_ih[2 * H:].reshape(1, H)
    b_hn = b_hh[2 * H:].reshape(1, H)

    enc_W = params["enc_W"][0]                                 # (H, 2H)
    enc_v = params["enc_v"].reshape(1, H)
    enc_w1, enc_w2 = enc_W[:, :H].T, enc_W[:, H:].T
    tgt_W = params["tgt_W"][0]
    tgt_v = params["tgt_v"].reshape(1, H)
    tgt_w1, tgt_w2 = tgt_W[:, :H].T, tgt_W[:, H:].T
    ptr_W = params["ptr_W"][0]                                 # (H, 3H)
    ptr_v = params["ptr_v"].reshape(1, H)
    ptr_w1, ptr_w2, ptr_w3 = ptr_W[:, :H].T, ptr_W[:, H:2 * H].T, ptr_W[:, 2 * H:].T

    weights = [w_ir_t, w_iz_t, w_in_t, w_hr_t, w_hz_t, w_hn_t,
               b_r, b_z, b_in, b_hn,
               enc_v, enc_w1, enc_w2,
               tgt_v, tgt_w1, tgt_w2,
               ptr_v, ptr_w1, ptr_w2, ptr_w3]

    in_specs = [
        pl.BlockSpec((Bt, S, H), lambda b: (b, 0, 0)),   # static_hidden
        pl.BlockSpec((Bt, H), lambda b: (b, 0)),         # state_embedding (squeezed)
        pl.BlockSpec((Bt, H), lambda b: (b, 0)),         # decoder_hidden  (squeezed)
        pl.BlockSpec((Bt, H), lambda b: (b, 0)),         # target_hidden   (squeezed)
        pl.BlockSpec((1, Bt, H), lambda b: (0, b, 0)),   # last_hh (1, B, H)
    ] + [pl.BlockSpec(w.shape, lambda b: (0, 0)) for w in weights]

    out_shape = (jax.ShapeDtypeStruct((B_pad, S), f32),        # probs (lane-dense)
                 jax.ShapeDtypeStruct((1, B_pad, H), f32))     # new last_hh (final layout)
    out_specs = (pl.BlockSpec((Bt, S), lambda b: (b, 0)),
                 pl.BlockSpec((1, Bt, H), lambda b: (0, b, 0)))

    # Advisory cost estimate for XLA scheduling.
    matmul_flops = 2 * B_pad * H * H * 11 + 6 * B_pad * S * H * H
    vector_flops = 20 * B_pad * S * H
    transcendentals = B_pad * (4 * S * H + 3 * H + 2 * S + 2)
    bytes_accessed = 4 * (int(static_p.size) + int(state_2d.size) + int(dec_2d.size)
                          + int(tgt_2d.size) + int(hh_p_in.size)
                          + int(n_steps) * sum(int(w.size) for w in weights)
                          + B_pad * S + B_pad * H)
    cost = pl.CostEstimate(flops=int(matmul_flops + vector_flops),
                           transcendentals=int(transcendentals),
                           bytes_accessed=int(bytes_accessed))

    probs_pad, hh_pad = pl.pallas_call(
        pointer_kernel,
        grid=(n_steps,),
        in_specs=in_specs,
        out_specs=out_specs,
        out_shape=out_shape,
        compiler_params=pltpu.CompilerParams(dimension_semantics=("parallel",)),
        cost_estimate=cost,
    )(static_p, state_2d, dec_2d, tgt_2d, hh_p_in, *weights)

    probs = probs_pad[:B]                          # (B, S)
    new_hh = hh_pad[:, :B]                         # (1, B, H) — already in final layout
    return probs, new_hh


# ------------------------ pure-JAX reference --------------------------------------
def pointer_reference(params, static, state_emb, dec, tgt, last_hh):
    B, S, H = static.shape
    x = dec[:, 0, :]
    h = last_hh[0]
    gi = x @ params["gru_w_ih"].T + params["gru_b_ih"]
    gh = h @ params["gru_w_hh"].T + params["gru_b_hh"]
    r = jax.nn.sigmoid(gi[:, :H] + gh[:, :H])
    z = jax.nn.sigmoid(gi[:, H:2 * H] + gh[:, H:2 * H])
    n = jnp.tanh(gi[:, 2 * H:] + r * gh[:, 2 * H:])
    h_new = (1.0 - z) * n + z * h
    rnn_out = h_new[:, None, :]

    def attn(v, W, query):
        hidden = jnp.concatenate(
            [static, jnp.broadcast_to(query, static.shape)], axis=2)      # (B,S,2H)
        u = jnp.tanh(jnp.einsum('hk,bsk->bhs', W[0], hidden))             # (B,H,S)
        a = jnp.einsum('h,bhs->bs', v[0, 0], u)
        return jax.nn.softmax(a, axis=1)[:, None, :]                      # (B,1,S)

    def pointer(context):
        energy = jnp.concatenate(
            [static, jnp.broadcast_to(context, static.shape),
             jnp.broadcast_to(state_emb, static.shape)], axis=2)          # (B,S,3H)
        u = jnp.tanh(jnp.einsum('hk,bsk->bhs', params["ptr_W"][0], energy))
        return jnp.einsum('h,bhs->bs', params["ptr_v"][0, 0], u)

    enc_a = attn(params["enc_v"], params["enc_W"], rnn_out)
    context = enc_a @ static
    probs_enc = pointer(context)

    tgt_a = attn(params["tgt_v"], params["tgt_W"], tgt)
    context_t = tgt_a @ static
    probs_tgt = pointer(context_t)

    return 5.0 * probs_enc + probs_tgt, h_new[None]


if __name__ == "__main__":
    B, S, H = 2, 8, 32
    key = jax.random.PRNGKey(0)
    ks = jax.random.split(key, 16)

    def u(k, shape, scale=0.1):
        return jax.random.uniform(k, shape, jnp.float32, -scale, scale)

    # The module's __init__ uses zero-init for v/W; we init with small random
    # values (deterministic via PRNGKey) so the kernel computes non-trivial math.
    params = dict(
        ptr_v=u(ks[0], (1, 1, H)),
        ptr_W=u(ks[1], (1, H, 3 * H)),
        gru_w_ih=u(ks[2], (3 * H, H)),
        gru_w_hh=u(ks[3], (3 * H, H)),
        gru_b_ih=u(ks[4], (3 * H,)),
        gru_b_hh=u(ks[5], (3 * H,)),
        enc_v=u(ks[6], (1, 1, H)),
        enc_W=u(ks[7], (1, H, 2 * H)),
        tgt_v=u(ks[8], (1, 1, H)),
        tgt_W=u(ks[9], (1, H, 2 * H)),
        # v_target / W_taret exist in __init__ but are never used by forward.
    )

    static_hidden = jax.random.normal(ks[10], (B, S, H), jnp.float32) * 0.5
    state_embedding = jax.random.normal(ks[11], (B, 1, H), jnp.float32) * 0.5
    decoder_hidden = jax.random.normal(ks[12], (B, 1, H), jnp.float32) * 0.5
    target_hidden = jax.random.normal(ks[13], (B, 1, H), jnp.float32) * 0.5
    last_hh = jax.random.normal(ks[14], (1, B, H), jnp.float32) * 0.5

    probs, new_hh = jax.jit(pointer_forward)(
        params, static_hidden, state_embedding, decoder_hidden,
        target_hidden, last_hh)
    jax.block_until_ready((probs, new_hh))

    ref_probs, ref_hh = pointer_reference(
        params, static_hidden, state_embedding, decoder_hidden,
        target_hidden, last_hh)

    assert probs.shape == (B, S) and new_hh.shape == (1, B, H)
    assert jnp.allclose(probs, ref_probs, atol=1e-4, rtol=1e-4), "probs mismatch"
    assert jnp.allclose(new_hh, ref_hh, atol=1e-4, rtol=1e-4), "last_hh mismatch"

    print("KERNEL_OK")
</pallas_src>

<mosaic_0001>
module attributes {stable_mosaic.version = 11 : i64} {
  func.func @pointer_kernel(%arg0: i32, %arg1: memref<2x8x32xf32, #tpu.memory_space<vmem>>, %arg2: memref<2x32xf32, #tpu.memory_space<vmem>>, %arg3: memref<2x32xf32, #tpu.memory_space<vmem>>, %arg4: memref<2x32xf32, #tpu.memory_space<vmem>>, %arg5: memref<1x2x32xf32, #tpu.memory_space<vmem>>, %arg6: memref<32x32xf32, #tpu.memory_space<vmem>>, %arg7: memref<32x32xf32, #tpu.memory_space<vmem>>, %arg8: memref<32x32xf32, #tpu.memory_space<vmem>>, %arg9: memref<32x32xf32, #tpu.memory_space<vmem>>, %arg10: memref<32x32xf32, #tpu.memory_space<vmem>>, %arg11: memref<32x32xf32, #tpu.memory_space<vmem>>, %arg12: memref<1x32xf32, #tpu.memory_space<vmem>>, %arg13: memref<1x32xf32, #tpu.memory_space<vmem>>, %arg14: memref<1x32xf32, #tpu.memory_space<vmem>>, %arg15: memref<1x32xf32, #tpu.memory_space<vmem>>, %arg16: memref<1x32xf32, #tpu.memory_space<vmem>>, %arg17: memref<32x32xf32, #tpu.memory_space<vmem>>, %arg18: memref<32x32xf32, #tpu.memory_space<vmem>>, %arg19: memref<1x32xf32, #tpu.memory_space<vmem>>, %arg20: memref<32x32xf32, #tpu.memory_space<vmem>>, %arg21: memref<32x32xf32, #tpu.memory_space<vmem>>, %arg22: memref<1x32xf32, #tpu.memory_space<vmem>>, %arg23: memref<32x32xf32, #tpu.memory_space<vmem>>, %arg24: memref<32x32xf32, #tpu.memory_space<vmem>>, %arg25: memref<32x32xf32, #tpu.memory_space<vmem>>, %arg26: memref<2x8xf32, #tpu.memory_space<vmem>>, %arg27: memref<1x2x32xf32, #tpu.memory_space<vmem>>) attributes {dimension_semantics = [#tpu.dimension_semantics<parallel>], iteration_bounds = array<i64: 1>, scalar_prefetch = 0 : i64, scratch_operands = 0 : i64, tpu.core_type = #tpu.core_type<tc>, window_params = [{transform_indices = @transform_0, window_bounds = array<i64: 2, 8, 32>}, {transform_indices = @transform_1, window_bounds = array<i64: 2, 32>}, {transform_indices = @transform_2, window_bounds = array<i64: 2, 32>}, {transform_indices = @transform_3, window_bounds = array<i64: 2, 32>}, {transform_indices = @transform_4, window_bounds = array<i64: 1, 2, 32>}, {pipeline_mode = #tpu.pipeline_mode<synchronous>, transform_indices = @transform_5, window_bounds = array<i64: 32, 32>}, {pipeline_mode = #tpu.pipeline_mode<synchronous>, transform_indices = @transform_6, window_bounds = array<i64: 32, 32>}, {pipeline_mode = #tpu.pipeline_mode<synchronous>, transform_indices = @transform_7, window_bounds = array<i64: 32, 32>}, {pipeline_mode = #tpu.pipeline_mode<synchronous>, transform_indices = @transform_8, window_bounds = array<i64: 32, 32>}, {pipeline_mode = #tpu.pipeline_mode<synchronous>, transform_indices = @transform_9, window_bounds = array<i64: 32, 32>}, {pipeline_mode = #tpu.pipeline_mode<synchronous>, transform_indices = @transform_10, window_bounds = array<i64: 32, 32>}, {pipeline_mode = #tpu.pipeline_mode<synchronous>, transform_indices = @transform_11, window_bounds = array<i64: 1, 32>}, {pipeline_mode = #tpu.pipeline_mode<synchronous>, transform_indices = @transform_12, window_bounds = array<i64: 1, 32>}, {pipeline_mode = #tpu.pipeline_mode<synchronous>, transform_indices = @transform_13, window_bounds = array<i64: 1, 32>}, {pipeline_mode = #tpu.pipeline_mode<synchronous>, transform_indices = @transform_14, window_bounds = array<i64: 1, 32>}, {pipeline_mode = #tpu.pipeline_mode<synchronous>, transform_indices = @transform_15, window_bounds = array<i64: 1, 32>}, {pipeline_mode = #tpu.pipeline_mode<synchronous>, transform_indices = @transform_16, window_bounds = array<i64: 32, 32>}, {pipeline_mode = #tpu.pipeline_mode<synchronous>, transform_indices = @transform_17, window_bounds = array<i64: 32, 32>}, {pipeline_mode = #tpu.pipeline_mode<synchronous>, transform_indices = @transform_18, window_bounds = array<i64: 1, 32>}, {pipeline_mode = #tpu.pipeline_mode<synchronous>, transform_indices = @transform_19, window_bounds = array<i64: 32, 32>}, {pipeline_mode = #tpu.pipeline_mode<synchronous>, transform_indices = @transform_20, window_bounds = array<i64: 32, 32>}, {pipeline_mode = #tpu.pipeline_mode<synchronous>, transform_indices = @transform_21, window_bounds = array<i64: 1, 32>}, {pipeline_mode = #tpu.pipeline_mode<synchronous>, transform_indices = @transform_22, window_bounds = array<i64: 32, 32>}, {pipeline_mode = #tpu.pipeline_mode<synchronous>, transform_indices = @transform_23, window_bounds = array<i64: 32, 32>}, {pipeline_mode = #tpu.pipeline_mode<synchronous>, transform_indices = @transform_24, window_bounds = array<i64: 32, 32>}, {transform_indices = @transform_25, window_bounds = array<i64: 2, 8>}, {transform_indices = @transform_26, window_bounds = array<i64: 1, 2, 32>}]} {
    %c0 = arith.constant 0 : index
    %c0_0 = arith.constant 0 : index
    %c0_1 = arith.constant 0 : index
    %0 = vector.load %arg1[%c0, %c0_0, %c0_1] : memref<2x8x32xf32, #tpu.memory_space<vmem>>, vector<2x8x32xf32>
    %c0_2 = arith.constant 0 : index
    %c0_3 = arith.constant 0 : index
    %1 = vector.load %arg3[%c0_2, %c0_3] : memref<2x32xf32, #tpu.memory_space<vmem>>, vector<2x32xf32>
    %c0_4 = arith.constant 0 : index
    %c0_5 = arith.constant 0 : index
    %c0_6 = arith.constant 0 : index
    %2 = vector.load %arg5[%c0_4, %c0_5, %c0_6] : memref<1x2x32xf32, #tpu.memory_space<vmem>>, vector<1x2x32xf32>
    %3 = vector.shape_cast %2 : vector<1x2x32xf32> to vector<2x32xf32>
    %c0_7 = arith.constant 0 : index
    %c0_8 = arith.constant 0 : index
    %4 = vector.load %arg2[%c0_7, %c0_8] : memref<2x32xf32, #tpu.memory_space<vmem>>, vector<2x32xf32>
    %c0_9 = arith.constant 0 : index
    %c0_10 = arith.constant 0 : index
    %5 = vector.load %arg4[%c0_9, %c0_10] : memref<2x32xf32, #tpu.memory_space<vmem>>, vector<2x32xf32>
    %c0_11 = arith.constant 0 : index
    %c0_12 = arith.constant 0 : index
    %6 = vector.load %arg6[%c0_11, %c0_12] : memref<32x32xf32, #tpu.memory_space<vmem>>, vector<32x32xf32>
    %cst = arith.constant dense<0.000000e+00> : vector<2x32xf32>
    %7 = tpu.matmul %1, %6, %cst {dimension_numbers = #tpu.dot_dimension_numbers<[1], [0], [0], [1], [0, 0, 1, 1], [], []>} : vector<2x32xf32>, vector<32x32xf32>, vector<2x32xf32> -> vector<2x32xf32>
    %c0_13 = arith.constant 0 : index
    %c0_14 = arith.constant 0 : index
    %8 = vector.load %arg9[%c0_13, %c0_14] : memref<32x32xf32, #tpu.memory_space<vmem>>, vector<32x32xf32>
    %cst_15 = arith.constant dense<0.000000e+00> : vector<2x32xf32>
    %9 = tpu.matmul %3, %8, %cst_15 {dimension_numbers = #tpu.dot_dimension_numbers<[1], [0], [0], [1], [0, 0, 1, 1], [], []>} : vector<2x32xf32>, vector<32x32xf32>, vector<2x32xf32> -> vector<2x32xf32>
    %10 = arith.addf %7, %9 : vector<2x32xf32>
    %c0_16 = arith.constant 0 : index
    %c0_17 = arith.constant 0 : index
    %11 = vector.load %arg12[%c0_16, %c0_17] : memref<1x32xf32, #tpu.memory_space<vmem>>, vector<1x32xf32>
    %12 = vector.broadcast %11 : vector<1x32xf32> to vector<2x32xf32>
    %13 = arith.addf %10, %12 : vector<2x32xf32>
    %14 = arith.negf %13 : vector<2x32xf32>
    %15 = math.exp %14 : vector<2x32xf32>
    %cst_18 = arith.constant 1.000000e+00 : f32
    %16 = vector.broadcast %cst_18 : f32 to vector<2x32xf32>
    %17 = arith.addf %16, %15 : vector<2x32xf32>
    %18 = arith.divf %16, %17 : vector<2x32xf32>
    %c0_19 = arith.constant 0 : index
    %c0_20 = arith.constant 0 : index
    %19 = vector.load %arg7[%c0_19, %c0_20] : memref<32x32xf32, #tpu.memory_space<vmem>>, vector<32x32xf32>
    %cst_21 = arith.constant dense<0.000000e+00> : vector<2x32xf32>
    %20 = tpu.matmul %1, %19, %cst_21 {dimension_numbers = #tpu.dot_dimension_numbers<[1], [0], [0], [1], [0, 0, 1, 1], [], []>} : vector<2x32xf32>, vector<32x32xf32>, vector<2x32xf32> -> vector<2x32xf32>
    %c0_22 = arith.constant 0 : index
    %c0_23 = arith.constant 0 : index
    %21 = vector.load %arg10[%c0_22, %c0_23] : memref<32x32xf32, #tpu.memory_space<vmem>>, vector<32x32xf32>
    %cst_24 = arith.constant dense<0.000000e+00> : vector<2x32xf32>
    %22 = tpu.matmul %3, %21, %cst_24 {dimension_numbers = #tpu.dot_dimension_numbers<[1], [0], [0], [1], [0, 0, 1, 1], [], []>} : vector<2x32xf32>, vector<32x32xf32>, vector<2x32xf32> -> vector<2x32xf32>
    %23 = arith.addf %20, %22 : vector<2x32xf32>
    %c0_25 = arith.constant 0 : index
    %c0_26 = arith.constant 0 : index
    %24 = vector.load %arg13[%c0_25, %c0_26] : memref<1x32xf32, #tpu.memory_space<vmem>>, vector<1x32xf32>
    %25 = vector.broadcast %24 : vector<1x32xf32> to vector<2x32xf32>
    %26 = arith.addf %23, %25 : vector<2x32xf32>
    %27 = arith.negf %26 : vector<2x32xf32>
    %28 = math.exp %27 : vector<2x32xf32>
    %cst_27 = arith.constant 1.000000e+00 : f32
    %29 = vector.broadcast %cst_27 : f32 to vector<2x32xf32>
    %30 = arith.addf %29, %28 : vector<2x32xf32>
    %31 = arith.divf %29, %30 : vector<2x32xf32>
    %c0_28 = arith.constant 0 : index
    %c0_29 = arith.constant 0 : index
    %32 = vector.load %arg8[%c0_28, %c0_29] : memref<32x32xf32, #tpu.memory_space<vmem>>, vector<32x32xf32>
    %cst_30 = arith.constant dense<0.000000e+00> : vector<2x32xf32>
    %33 = tpu.matmul %1, %32, %cst_30 {dimension_numbers = #tpu.dot_dimension_numbers<[1], [0], [0], [1], [0, 0, 1, 1], [], []>} : vector<2x32xf32>, vector<32x32xf32>, vector<2x32xf32> -> vector<2x32xf32>
    %c0_31 = arith.constant 0 : index
    %c0_32 = arith.constant 0 : index
    %34 = vector.load %arg14[%c0_31, %c0_32] : memref<1x32xf32, #tpu.memory_space<vmem>>, vector<1x32xf32>
    %35 = vector.broadcast %34 : vector<1x32xf32> to vector<2x32xf32>
    %36 = arith.addf %33, %35 : vector<2x32xf32>
    %c0_33 = arith.constant 0 : index
    %c0_34 = arith.constant 0 : index
    %37 = vector.load %arg11[%c0_33, %c0_34] : memref<32x32xf32, #tpu.memory_space<vmem>>, vector<32x32xf32>
    %cst_35 = arith.constant dense<0.000000e+00> : vector<2x32xf32>
    %38 = tpu.matmul %3, %37, %cst_35 {dimension_numbers = #tpu.dot_dimension_numbers<[1], [0], [0], [1], [0, 0, 1, 1], [], []>} : vector<2x32xf32>, vector<32x32xf32>, vector<2x32xf32> -> vector<2x32xf32>
    %c0_36 = arith.constant 0 : index
    %c0_37 = arith.constant 0 : index
    %39 = vector.load %arg15[%c0_36, %c0_37] : memref<1x32xf32, #tpu.memory_space<vmem>>, vector<1x32xf32>
    %40 = vector.broadcast %39 : vector<1x32xf32> to vector<2x32xf32>
    %41 = arith.addf %38, %40 : vector<2x32xf32>
    %42 = arith.mulf %18, %41 : vector<2x32xf32>
    %43 = arith.addf %36, %42 : vector<2x32xf32>
    %44 = math.tanh %43 : vector<2x32xf32>
    %cst_38 = arith.constant 1.000000e+00 : f32
    %45 = vector.broadcast %cst_38 : f32 to vector<2x32xf32>
    %46 = arith.subf %45, %31 : vector<2x32xf32>
    %47 = arith.mulf %46, %44 : vector<2x32xf32>
    %48 = arith.mulf %31, %3 : vector<2x32xf32>
    %49 = arith.addf %47, %48 : vector<2x32xf32>
    %50 = vector.shape_cast %0 : vector<2x8x32xf32> to vector<16x32xf32>
    %c0_39 = arith.constant 0 : index
    %c0_40 = arith.constant 0 : index
    %51 = vector.load %arg23[%c0_39, %c0_40] : memref<32x32xf32, #tpu.memory_space<vmem>>, vector<32x32xf32>
    %cst_41 = arith.constant dense<0.000000e+00> : vector<16x32xf32>
    %52 = tpu.matmul %50, %51, %cst_41 {dimension_numbers = #tpu.dot_dimension_numbers<[1], [0], [0], [1], [0, 0, 1, 1], [], []>} : vector<16x32xf32>, vector<32x32xf32>, vector<16x32xf32> -> vector<16x32xf32>
    %53 = vector.shape_cast %52 : vector<16x32xf32> to vector<2x8x32xf32>
    %c0_42 = arith.constant 0 : index
    %c0_43 = arith.constant 0 : index
    %54 = vector.load %arg25[%c0_42, %c0_43] : memref<32x32xf32, #tpu.memory_space<vmem>>, vector<32x32xf32>
    %cst_44 = arith.constant dense<0.000000e+00> : vector<2x32xf32>
    %55 = tpu.matmul %4, %54, %cst_44 {dimension_numbers = #tpu.dot_dimension_numbers<[1], [0], [0], [1], [0, 0, 1, 1], [], []>} : vector<2x32xf32>, vector<32x32xf32>, vector<2x32xf32> -> vector<2x32xf32>
    %c0_45 = arith.constant 0 : index
    %c0_46 = arith.constant 0 : index
    %56 = vector.load %arg17[%c0_45, %c0_46] : memref<32x32xf32, #tpu.memory_space<vmem>>, vector<32x32xf32>
    %cst_47 = arith.constant dense<0.000000e+00> : vector<16x32xf32>
    %57 = tpu.matmul %50, %56, %cst_47 {dimension_numbers = #tpu.dot_dimension_numbers<[1], [0], [0], [1], [0, 0, 1, 1], [], []>} : vector<16x32xf32>, vector<32x32xf32>, vector<16x32xf32> -> vector<16x32xf32>
    %58 = vector.shape_cast %57 : vector<16x32xf32> to vector<2x8x32xf32>
    %c0_48 = arith.constant 0 : index
    %c0_49 = arith.constant 0 : index
    %59 = vector.load %arg18[%c0_48, %c0_49] : memref<32x32xf32, #tpu.memory_space<vmem>>, vector<32x32xf32>
    %cst_50 = arith.constant dense<0.000000e+00> : vector<2x32xf32>
    %60 = tpu.matmul %49, %59, %cst_50 {dimension_numbers = #tpu.dot_dimension_numbers<[1], [0], [0], [1], [0, 0, 1, 1], [], []>} : vector<2x32xf32>, vector<32x32xf32>, vector<2x32xf32> -> vector<2x32xf32>
    %61 = vector.shape_cast %60 : vector<2x32xf32> to vector<2x1x32xf32>
    %62 = vector.broadcast %61 : vector<2x1x32xf32> to vector<2x8x32xf32>
    %63 = arith.addf %58, %62 : vector<2x8x32xf32>
    %64 = math.tanh %63 : vector<2x8x32xf32>
    %c0_51 = arith.constant 0 : index
    %c0_52 = arith.constant 0 : index
    %65 = vector.load %arg16[%c0_51, %c0_52] : memref<1x32xf32, #tpu.memory_space<vmem>>, vector<1x32xf32>
    %66 = vector.shape_cast %65 : vector<1x32xf32> to vector<1x1x32xf32>
    %67 = vector.broadcast %66 : vector<1x1x32xf32> to vector<2x8x32xf32>
    %68 = arith.mulf %64, %67 : vector<2x8x32xf32>
    %cst_53 = arith.constant dense<0.000000e+00> : vector<2x8xf32>
    %69 = vector.multi_reduction <add>, %68, %cst_53 [2] : vector<2x8x32xf32> to vector<2x8xf32>
    %cst_54 = arith.constant dense<0xFF800000> : vector<2xf32>
    %70 = vector.multi_reduction <maximumf>, %69, %cst_54 [1] : vector<2x8xf32> to vector<2xf32>
    %71 = vector.shape_cast %70 : vector<2xf32> to vector<2x1xf32>
    %72 = vector.broadcast %71 : vector<2x1xf32> to vector<2x8xf32>
    %73 = arith.subf %69, %72 : vector<2x8xf32>
    %74 = math.exp %73 : vector<2x8xf32>
    %cst_55 = arith.constant dense<0.000000e+00> : vector<2xf32>
    %75 = vector.multi_reduction <add>, %74, %cst_55 [1] : vector<2x8xf32> to vector<2xf32>
    %76 = vector.shape_cast %75 : vector<2xf32> to vector<2x1xf32>
    %77 = tpu.reciprocal %76 : vector<2x1xf32> -> vector<2x1xf32>
    %78 = vector.broadcast %77 : vector<2x1xf32> to vector<2x8xf32>
    %79 = arith.mulf %74, %78 : vector<2x8xf32>
    %80 = vector.shape_cast %79 : vector<2x8xf32> to vector<2x8x1xf32>
    %81 = vector.broadcast %80 : vector<2x8x1xf32> to vector<2x8x32xf32>
    %82 = arith.mulf %81, %0 : vector<2x8x32xf32>
    %cst_56 = arith.constant dense<0.000000e+00> : vector<2x32xf32>
    %83 = vector.multi_reduction <add>, %82, %cst_56 [1] : vector<2x8x32xf32> to vector<2x32xf32>
    %c0_57 = arith.constant 0 : index
    %c0_58 = arith.constant 0 : index
    %84 = vector.load %arg24[%c0_57, %c0_58] : memref<32x32xf32, #tpu.memory_space<vmem>>, vector<32x32xf32>
    %cst_59 = arith.constant dense<0.000000e+00> : vector<2x32xf32>
    %85 = tpu.matmul %83, %84, %cst_59 {dimension_numbers = #tpu.dot_dimension_numbers<[1], [0], [0], [1], [0, 0, 1, 1], [], []>} : vector<2x32xf32>, vector<32x32xf32>, vector<2x32xf32> -> vector<2x32xf32>
    %86 = arith.addf %85, %55 : vector<2x32xf32>
    %87 = vector.shape_cast %86 : vector<2x32xf32> to vector<2x1x32xf32>
    %88 = vector.broadcast %87 : vector<2x1x32xf32> to vector<2x8x32xf32>
    %89 = arith.addf %53, %88 : vector<2x8x32xf32>
    %90 = math.tanh %89 : vector<2x8x32xf32>
    %c0_60 = arith.constant 0 : index
    %c0_61 = arith.constant 0 : index
    %91 = vector.load %arg22[%c0_60, %c0_61] : memref<1x32xf32, #tpu.memory_space<vmem>>, vector<1x32xf32>
    %92 = vector.shape_cast %91 : vector<1x32xf32> to vector<1x1x32xf32>
    %93 = vector.broadcast %92 : vector<1x1x32xf32> to vector<2x8x32xf32>
    %94 = arith.mulf %90, %93 : vector<2x8x32xf32>
    %cst_62 = arith.constant dense<0.000000e+00> : vector<2x8xf32>
    %95 = vector.multi_reduction <add>, %94, %cst_62 [2] : vector<2x8x32xf32> to vector<2x8xf32>
    %c0_63 = arith.constant 0 : index
    %c0_64 = arith.constant 0 : index
    %96 = vector.load %arg20[%c0_63, %c0_64] : memref<32x32xf32, #tpu.memory_space<vmem>>, vector<32x32xf32>
    %cst_65 = arith.constant dense<0.000000e+00> : vector<16x32xf32>
    %97 = tpu.matmul %50, %96, %cst_65 {dimension_numbers = #tpu.dot_dimension_numbers<[1], [0], [0], [1], [0, 0, 1, 1], [], []>} : vector<16x32xf32>, vector<32x32xf32>, vector<16x32xf32> -> vector<16x32xf32>
    %98 = vector.shape_cast %97 : vector<16x32xf32> to vector<2x8x32xf32>
    %c0_66 = arith.constant 0 : index
    %c0_67 = arith.constant 0 : index
    %99 = vector.load %arg21[%c0_66, %c0_67] : memref<32x32xf32, #tpu.memory_space<vmem>>, vector<32x32xf32>
    %cst_68 = arith.constant dense<0.000000e+00> : vector<2x32xf32>
    %100 = tpu.matmul %5, %99, %cst_68 {dimension_numbers = #tpu.dot_dimension_numbers<[1], [0], [0], [1], [0, 0, 1, 1], [], []>} : vector<2x32xf32>, vector<32x32xf32>, vector<2x32xf32> -> vector<2x32xf32>
    %101 = vector.shape_cast %100 : vector<2x32xf32> to vector<2x1x32xf32>
    %102 = vector.broadcast %101 : vector<2x1x32xf32> to vector<2x8x32xf32>
    %103 = arith.addf %98, %102 : vector<2x8x32xf32>
    %104 = math.tanh %103 : vector<2x8x32xf32>
    %c0_69 = arith.constant 0 : index
    %c0_70 = arith.constant 0 : index
    %105 = vector.load %arg19[%c0_69, %c0_70] : memref<1x32xf32, #tpu.memory_space<vmem>>, vector<1x32xf32>
    %106 = vector.shape_cast %105 : vector<1x32xf32> to vector<1x1x32xf32>
    %107 = vector.broadcast %106 : vector<1x1x32xf32> to vector<2x8x32xf32>
    %108 = arith.mulf %104, %107 : vector<2x8x32xf32>
    %cst_71 = arith.constant dense<0.000000e+00> : vector<2x8xf32>
    %109 = vector.multi_reduction <add>, %108, %cst_71 [2] : vector<2x8x32xf32> to vector<2x8xf32>
    %cst_72 = arith.constant dense<0xFF800000> : vector<2xf32>
    %110 = vector.multi_reduction <maximumf>, %109, %cst_72 [1] : vector<2x8xf32> to vector<2xf32>
    %111 = vector.shape_cast %110 : vector<2xf32> to vector<2x1xf32>
    %112 = vector.broadcast %111 : vector<2x1xf32> to vector<2x8xf32>
    %113 = arith.subf %109, %112 : vector<2x8xf32>
    %114 = math.exp %113 : vector<2x8xf32>
    %cst_73 = arith.constant dense<0.000000e+00> : vector<2xf32>
    %115 = vector.multi_reduction <add>, %114, %cst_73 [1] : vector<2x8xf32> to vector<2xf32>
    %116 = vector.shape_cast %115 : vector<2xf32> to vector<2x1xf32>
    %117 = tpu.reciprocal %116 : vector<2x1xf32> -> vector<2x1xf32>
    %118 = vector.broadcast %117 : vector<2x1xf32> to vector<2x8xf32>
    %119 = arith.mulf %114, %118 : vector<2x8xf32>
    %120 = vector.shape_cast %119 : vector<2x8xf32> to vector<2x8x1xf32>
    %121 = vector.broadcast %120 : vector<2x8x1xf32> to vector<2x8x32xf32>
    %122 = arith.mulf %121, %0 : vector<2x8x32xf32>
    %cst_74 = arith.constant dense<0.000000e+00> : vector<2x32xf32>
    %123 = vector.multi_reduction <add>, %122, %cst_74 [1] : vector<2x8x32xf32> to vector<2x32xf32>
    %c0_75 = arith.constant 0 : index
    %c0_76 = arith.constant 0 : index
    %124 = vector.load %arg24[%c0_75, %c0_76] : memref<32x32xf32, #tpu.memory_space<vmem>>, vector<32x32xf32>
    %cst_77 = arith.constant dense<0.000000e+00> : vector<2x32xf32>
    %125 = tpu.matmul %123, %124, %cst_77 {dimension_numbers = #tpu.dot_dimension_numbers<[1], [0], [0], [1], [0, 0, 1, 1], [], []>} : vector<2x32xf32>, vector<32x32xf32>, vector<2x32xf32> -> vector<2x32xf32>
    %126 = arith.addf %125, %55 : vector<2x32xf32>
    %127 = vector.shape_cast %126 : vector<2x32xf32> to vector<2x1x32xf32>
    %128 = vector.broadcast %127 : vector<2x1x32xf32> to vector<2x8x32xf32>
    %129 = arith.addf %53, %128 : vector<2x8x32xf32>
    %130 = math.tanh %129 : vector<2x8x32xf32>
    %c0_78 = arith.constant 0 : index
    %c0_79 = arith.constant 0 : index
    %131 = vector.load %arg22[%c0_78, %c0_79] : memref<1x32xf32, #tpu.memory_space<vmem>>, vector<1x32xf32>
    %132 = vector.shape_cast %131 : vector<1x32xf32> to vector<1x1x32xf32>
    %133 = vector.broadcast %132 : vector<1x1x32xf32> to vector<2x8x32xf32>
    %134 = arith.mulf %130, %133 : vector<2x8x32xf32>
    %cst_80 = arith.constant dense<0.000000e+00> : vector<2x8xf32>
    %135 = vector.multi_reduction <add>, %134, %cst_80 [2] : vector<2x8x32xf32> to vector<2x8xf32>
    %cst_81 = arith.constant 5.000000e+00 : f32
    %136 = vector.broadcast %cst_81 : f32 to vector<2x8xf32>
    %137 = arith.mulf %136, %95 : vector<2x8xf32>
    %138 = arith.addf %137, %135 : vector<2x8xf32>
    %c0_82 = arith.constant 0 : index
    %c0_83 = arith.constant 0 : index
    %139 = vector.load %arg26[%c0_82, %c0_83] : memref<2x8xf32, #tpu.memory_space<vmem>>, vector<2x8xf32>
    tpu.vector_store %arg26[%c0_82, %c0_83], %138 {strides = array<i32>} : memref<2x8xf32, #tpu.memory_space<vmem>>, vector<2x8xf32>,
    %c0_84 = arith.constant 0 : index
    %c0_85 = arith.constant 0 : index
    %c0_86 = arith.constant 0 : index
    %140 = vector.load %arg27[%c0_84, %c0_85, %c0_86] : memref<1x2x32xf32, #tpu.memory_space<vmem>>, vector<1x2x32xf32>
    %141 = vector.shape_cast %140 : vector<1x2x32xf32> to vector<2x32xf32>
    %142 = vector.shape_cast %49 : vector<2x32xf32> to vector<1x2x32xf32>
    tpu.vector_store %arg27[%c0_84, %c0_85, %c0_86], %142 {strides = array<i32>} : memref<1x2x32xf32, #tpu.memory_space<vmem>>, vector<1x2x32xf32>,
    return
  }
  func.func @transform_0(%arg0: i32) -> (i32, i32, i32) {
    %c0_i32 = arith.constant 0 : i32
    %c0_i32_0 = arith.constant 0 : i32
    %c0_i32_1 = arith.constant 0 : i32
    return %arg0, %c0_i32, %c0_i32_0 : i32, i32, i32
  }
  func.func @transform_1(%arg0: i32) -> (i32, i32) {
    %c0_i32 = arith.constant 0 : i32
    %c0_i32_0 = arith.constant 0 : i32
    return %arg0, %c0_i32 : i32, i32
  }
  func.func @transform_2(%arg0: i32) -> (i32, i32) {
    %c0_i32 = arith.constant 0 : i32
    %c0_i32_0 = arith.constant 0 : i32
    return %arg0, %c0_i32 : i32, i32
  }
  func.func @transform_3(%arg0: i32) -> (i32, i32) {
    %c0_i32 = arith.constant 0 : i32
    %c0_i32_0 = arith.constant 0 : i32
    return %arg0, %c0_i32 : i32, i32
  }
  func.func @transform_4(%arg0: i32) -> (i32, i32, i32) {
    %c0_i32 = arith.constant 0 : i32
    %c0_i32_0 = arith.constant 0 : i32
    %c0_i32_1 = arith.constant 0 : i32
    return %c0_i32, %arg0, %c0_i32_0 : i32, i32, i32
  }
  func.func @transform_5(%arg0: i32) -> (i32, i32) {
    %c0_i32 = arith.constant 0 : i32
    %c0_i32_0 = arith.constant 0 : i32
    %c0_i32_1 = arith.constant 0 : i32
    return %c0_i32, %c0_i32_0 : i32, i32
  }
  func.func @transform_6(%arg0: i32) -> (i32, i32) {
    %c0_i32 = arith.constant 0 : i32
    %c0_i32_0 = arith.constant 0 : i32
    %c0_i32_1 = arith.constant 0 : i32
    return %c0_i32, %c0_i32_0 : i32, i32
  }
  func.func @transform_7(%arg0: i32) -> (i32, i32) {
    %c0_i32 = arith.constant 0 : i32
    %c0_i32_0 = arith.constant 0 : i32
    %c0_i32_1 = arith.constant 0 : i32
    return %c0_i32, %c0_i32_0 : i32, i32
  }
  func.func @transform_8(%arg0: i32) -> (i32, i32) {
    %c0_i32 = arith.constant 0 : i32
    %c0_i32_0 = arith.constant 0 : i32
    %c0_i32_1 = arith.constant 0 : i32
    return %c0_i32, %c0_i32_0 : i32, i32
  }
  func.func @transform_9(%arg0: i32) -> (i32, i32) {
    %c0_i32 = arith.constant 0 : i32
    %c0_i32_0 = arith.constant 0 : i32
    %c0_i32_1 = arith.constant 0 : i32
    return %c0_i32, %c0_i32_0 : i32, i32
  }
  func.func @transform_10(%arg0: i32) -> (i32, i32) {
    %c0_i32 = arith.constant 0 : i32
    %c0_i32_0 = arith.constant 0 : i32
    %c0_i32_1 = arith.constant 0 : i32
    return %c0_i32, %c0_i32_0 : i32, i32
  }
  func.func @transform_11(%arg0: i32) -> (i32, i32) {
    %c0_i32 = arith.constant 0 : i32
    %c0_i32_0 = arith.constant 0 : i32
    %c0_i32_1 = arith.constant 0 : i32
    return %c0_i32, %c0_i32_0 : i32, i32
  }
  func.func @transform_12(%arg0: i32) -> (i32, i32) {
    %c0_i32 = arith.constant 0 : i32
    %c0_i32_0 = arith.constant 0 : i32
    %c0_i32_1 = arith.constant 0 : i32
    return %c0_i32, %c0_i32_0 : i32, i32
  }
  func.func @transform_13(%arg0: i32) -> (i32, i32) {
    %c0_i32 = arith.constant 0 : i32
    %c0_i32_0 = arith.constant 0 : i32
    %c0_i32_1 = arith.constant 0 : i32
    return %c0_i32, %c0_i32_0 : i32, i32
  }
  func.func @transform_14(%arg0: i32) -> (i32, i32) {
    %c0_i32 = arith.constant 0 : i32
    %c0_i32_0 = arith.constant 0 : i32
    %c0_i32_1 = arith.constant 0 : i32
    return %c0_i32, %c0_i32_0 : i32, i32
  }
  func.func @transform_15(%arg0: i32) -> (i32, i32) {
    %c0_i32 = arith.constant 0 : i32
    %c0_i32_0 = arith.constant 0 : i32
    %c0_i32_1 = arith.constant 0 : i32
    return %c0_i32, %c0_i32_0 : i32, i32
  }
  func.func @transform_16(%arg0: i32) -> (i32, i32) {
    %c0_i32 = arith.constant 0 : i32
    %c0_i32_0 = arith.constant 0 : i32
    %c0_i32_1 = arith.constant 0 : i32
    return %c0_i32, %c0_i32_0 : i32, i32
  }
  func.func @transform_17(%arg0: i32) -> (i32, i32) {
    %c0_i32 = arith.constant 0 : i32
    %c0_i32_0 = arith.constant 0 : i32
    %c0_i32_1 = arith.constant 0 : i32
    return %c0_i32, %c0_i32_0 : i32, i32
  }
  func.func @transform_18(%arg0: i32) -> (i32, i32) {
    %c0_i32 = arith.constant 0 : i32
    %c0_i32_0 = arith.constant 0 : i32
    %c0_i32_1 = arith.constant 0 : i32
    return %c0_i32, %c0_i32_0 : i32, i32
  }
  func.func @transform_19(%arg0: i32) -> (i32, i32) {
    %c0_i32 = arith.constant 0 : i32
    %c0_i32_0 = arith.constant 0 : i32
    %c0_i32_1 = arith.constant 0 : i32
    return %c0_i32, %c0_i32_0 : i32, i32
  }
  func.func @transform_20(%arg0: i32) -> (i32, i32) {
    %c0_i32 = arith.constant 0 : i32
    %c0_i32_0 = arith.constant 0 : i32
    %c0_i32_1 = arith.constant 0 : i32
    return %c0_i32, %c0_i32_0 : i32, i32
  }
  func.func @transform_21(%arg0: i32) -> (i32, i32) {
    %c0_i32 = arith.constant 0 : i32
    %c0_i32_0 = arith.constant 0 : i32
    %c0_i32_1 = arith.constant 0 : i32
    return %c0_i32, %c0_i32_0 : i32, i32
  }
  func.func @transform_22(%arg0: i32) -> (i32, i32) {
    %c0_i32 = arith.constant 0 : i32
    %c0_i32_0 = arith.constant 0 : i32
    %c0_i32_1 = arith.constant 0 : i32
    return %c0_i32, %c0_i32_0 : i32, i32
  }
  func.func @transform_23(%arg0: i32) -> (i32, i32) {
    %c0_i32 = arith.constant 0 : i32
    %c0_i32_0 = arith.constant 0 : i32
    %c0_i32_1 = arith.constant 0 : i32
    return %c0_i32, %c0_i32_0 : i32, i32
  }
  func.func @transform_24(%arg0: i32) -> (i32, i32) {
    %c0_i32 = arith.constant 0 : i32
    %c0_i32_0 = arith.constant 0 : i32
    %c0_i32_1 = arith.constant 0 : i32
    return %c0_i32, %c0_i32_0 : i32, i32
  }
  func.func @transform_25(%arg0: i32) -> (i32, i32) {
    %c0_i32 = arith.constant 0 : i32
    %c0_i32_0 = arith.constant 0 : i32
    return %arg0, %c0_i32 : i32, i32
  }
  func.func @transform_26(%arg0: i32) -> (i32, i32, i32) {
    %c0_i32 = arith.constant 0 : i32
    %c0_i32_0 = arith.constant 0 : i32
    %c0_i32_1 = arith.constant 0 : i32
    return %c0_i32, %arg0, %c0_i32_0 : i32, i32, i32
  }
}

</mosaic_0001>

<bundles_post_ra>
// kernel: pointer_forward.1
= control target key start
LH: loop header
LB: loop body
LE: loop exit
PB: predicated region body
PF: predicated region fallthrough
CT: control target
= control target key end

     0   :  { %s2621_s0 = inlined_call_operand.vmem [shape: f32[2,8,32], index: 0, kind: input, shape index: {}]   ;;  %s2622_s1 = inlined_call_operand.vmem [shape: f32[2,32], index: 1, kind: input, shape index: {}]   ;;  %s2623_s2 = inlined_call_operand.vmem [shape: f32[2,32], index: 2, kind: input, shape index: {}]   ;;  %s2624_s3 = inlined_call_operand.vmem [shape: f32[2,32], index: 3, kind: input, shape index: {}]   ;;  %s2625_s4 = inlined_call_operand.vmem [shape: f32[1,2,32], index: 4, kind: input, shape index: {}]   ;;  %s2626_s5 = inlined_call_operand.vmem [shape: f32[32,32], index: 5, kind: input, shape index: {}]   ;;  %s2627_s6 = inlined_call_operand.vmem [shape: f32[32,32], index: 6, kind: input, shape index: {}]   ;;  %s2628_s7 = inlined_call_operand.vmem [shape: f32[32,32], index: 7, kind: input, shape index: {}]   ;;  %s2629_s8 = inlined_call_operand.vmem [shape: f32[32,32], index: 8, kind: input, shape index: {}]   ;;  %s2630_s9 = inlined_call_operand.vmem [shape: f32[32,32], index: 9, kind: input, shape index: {}]   ;;  %s2631_s10 = inlined_call_operand.vmem [shape: f32[32,32], index: 10, kind: input, shape index: {}]   ;;  %s2632_s11 = inlined_call_operand.vmem [shape: f32[1,32], index: 11, kind: input, shape index: {}]   ;;  %s2633_s12 = inlined_call_operand.vmem [shape: f32[1,32], index: 12, kind: input, shape index: {}]   ;;  %s2634_s13 = inlined_call_operand.vmem [shape: f32[1,32], index: 13, kind: input, shape index: {}]   ;;  %s2635_s14 = inlined_call_operand.vmem [shape: f32[1,32], index: 14, kind: input, shape index: {}]   ;;  %s2636_s15 = inlined_call_operand.vmem [shape: f32[1,32], index: 15, kind: input, shape index: {}]   ;;  %s2637_s16 = inlined_call_operand.vmem [shape: f32[32,32], index: 16, kind: input, shape index: {}]   ;;  %s2638_s17 = inlined_call_operand.vmem [shape: f32[32,32], index: 17, kind: input, shape index: {}]   ;;  %s2639_s18 = inlined_call_operand.vmem [shape: f32[1,32], index: 18, kind: input, shape index: {}]   ;;  %s2640_s19 = inlined_call_operand.vmem [shape: f32[32,32], index: 19, kind: input, shape index: {}]   ;;  %s2641_s20 = inlined_call_operand.vmem [shape: f32[32,32], index: 20, kind: input, shape index: {}]   ;;  %s2642_s21 = inlined_call_operand.vmem [shape: f32[1,32], index: 21, kind: input, shape index: {}]   ;;  %s2643_s22 = inlined_call_operand.vmem [shape: f32[32,32], index: 22, kind: input, shape index: {}]   ;;  %s2644_s23 = inlined_call_operand.vmem [shape: f32[32,32], index: 23, kind: input, shape index: {}]   ;;  %s2645_s24 = inlined_call_operand.vmem [shape: f32[32,32], index: 24, kind: input, shape index: {}]   ;;  %s2646_s25 = inlined_call_operand.hbm [shape: f32[2,8], index: 25, kind: output, shape index: {0}]   ;;  %s2647_s26 = inlined_call_operand.hbm [shape: f32[1,2,32], index: 26, kind: output, shape index: {1}]  }
   0x1   :  { %2655 = sst [smem:[#allocation8_spill]] %s2621_s0 }
   0x2   :  { %2656 = sst [smem:[#allocation9_spill]] %s2622_s1 }
   0x3   :  { %2657 = sst [smem:[#allocation10_spill]] %s2623_s2 }
   0x4   :  { %2658 = sst [smem:[#allocation11_spill]] %s2624_s3 }
   0x5   :  { %2659 = sst [smem:[#allocation12_spill]] %s2625_s4 }
   0x6   :  { %2660 = sst [smem:[#allocation13_spill]] %s2626_s5 }
   0x7   :  { %2661 = sst [smem:[#allocation14_spill]] %s2627_s6 }
   0x8   :  { %2662 = sst [smem:[#allocation15_spill]] %s2628_s7 }
   0x9   :  { %2663 = sst [smem:[#allocation16_spill]] %s2629_s8 }
   0xa   :  { %2664 = sst [smem:[#allocation17_spill]] %s2630_s9 }
   0xb   :  { %2665 = sst [smem:[#allocation18_spill]] %s2631_s10 }
   0xc   :  { %32 = vsyncpa [#allocation3], 0  ;;  %s2666_s7 = sld [smem:[#allocation16_spill]]  ;;  %s2667_s0 = sld [smem:[#allocation13_spill]]  ;;  %v2094_v3 = vmov 0.0|0.0   ;;  %vm2095_vm0 = vmmov 0  }
   0xd   :  { %1909 = vmatprep.subr.bf16.mxu0 %v2094_v3  ;;  %1915 = vmatprep.subr.bf16.mxu1 %v2094_v3  ;;  %v2096_v11 = vmov 0.0   ;;  %s2668_s4 = sld [smem:[#allocation17_spill]]  ;;  %s2669_s2 = sld [smem:[#allocation14_spill]]  ;;  %vm98_vm1 = vcmask 261120  }
   0xe   :  { %1763 = vmatprep.mubr.msk.f32.mxu0 %vm2095_vm0, %v2096_v11  ;;  %1774 = vmatprep.mubr.msk.f32.mxu1 %vm2095_vm0, %v2096_v11  ;;  %s2670_s27 = sld [smem:[#allocation12_spill]] }
  0x12   :  { %v94_v0 = vld [vmem:[%s2666_s7] sm:$0xff]  ;;  %v95_v1 = vld [vmem:[%s2666_s7 + $0x8] sm:$0xff]  ;;  %v96_v6 = vld [vmem:[%s2666_s7 + $0x10] sm:$0xff] }
  0x13   :  { %v90_v2 = vld [vmem:[%s2667_s0] sm:$0xff]  ;;  %v1910_v4 = vpack.c.bf16 %v95_v1, %v94_v0  ;;  %v91_v5 = vld [vmem:[%s2667_s0 + $0x8] sm:$0xff]  ;;  %v97_v7 = vld [vmem:[%s2666_s7 + $0x18] sm:$0xff]  ;;  %s2671_s7 = sld [smem:[#allocation10_spill]] }
  0x14   :  { %v1916_v8 = vpack.c.bf16 %v91_v5, %v90_v2  ;;  %v92_v9 = vld [vmem:[%s2667_s0 + $0x10] sm:$0xff]  ;;  %v93_v10 = vld [vmem:[%s2667_s0 + $0x18] sm:$0xff]  ;;  %v1913_v12 = vpack.c.bf16 %v97_v7, %v96_v6  ;;  %v263_v14 = vld [vmem:[%s2668_s4] sm:$0xff] }
  0x15   :  { %1911 = vmatpush3.bf16.msra.mxu0 %v1910_v4  ;;  %v1919_v13 = vpack.c.bf16 %v93_v10, %v92_v9  ;;  %v264_v15 = vld [vmem:[%s2668_s4 + $0x8] sm:$0xff]  ;;  %v259_v16 = vld [vmem:[%s2669_s2] sm:$0xff]  ;;  %v265_v22 = vld [vmem:[%s2668_s4 + $0x10] sm:$0xff] }
  0x16   :  { %1917 = vmatpush3.bf16.msra.mxu1 %v1916_v8  ;;  %1912 = vmatprep.subr.bf16.mxu0 %v2094_v3  ;;  %v260_v17 = vld [vmem:[%s2669_s2 + $0x8] sm:$0xff]  ;;  %v2283_v18 = vld [vmem:[%s2670_s27] sm:$0x3]  ;;  %v1922_v20 = vpack.c.bf16 %v264_v15, %v263_v14  ;;  %v266_v23 = vld [vmem:[%s2668_s4 + $0x18] sm:$0xff] }
  0x17   :  { %1918 = vmatprep.subr.bf16.mxu1 %v2094_v3  ;;  %v1928_v21 = vpack.c.bf16 %v260_v17, %v259_v16 }
  0x19   :  { %1914 = vmatpush3.bf16.msra.mxu0 %v1913_v12  ;;  %v86_v19 = vld [vmem:[%s2671_s7] sm:$0x3] }
  0x1a   :  { %1920 = vmatpush3.bf16.msra.mxu1 %v1919_v13  ;;  %1921 = vmatprep.subr.bf16.mxu0 %v2094_v3 }
  0x1b   :  { %33 = vsyncpa [#allocation5], 0  ;;  %1927 = vmatprep.subr.bf16.mxu1 %v2094_v3  ;;  %v261_v24 = vld [vmem:[%s2669_s2 + $0x10] sm:$0xff]  ;;  %v262_v25 = vld [vmem:[%s2669_s2 + $0x18] sm:$0xff]  ;;  %v1925_v26 = vpack.c.bf16 %v266_v23, %v265_v22  ;;  %s2672_s27 = sld [smem:[#allocation15_spill]]  ;;  %s2673_s8 = sld [smem:[#allocation18_spill]] }
  0x1c   :  { %1764 = vmatmul.mubr.msk.f32.vlgmr.msra.gmra.mrb[0].mxu0 %vm98_vm1, %v2283_v18  ;;  %v1931_v27 = vpack.c.bf16 %v262_v25, %v261_v24  ;;  %v675_v40 = vld [vmem:[%s2645_s24] sm:$0xff]  ;;  %v676_v41 = vld [vmem:[%s2645_s24 + $0x8] sm:$0xff]  ;;  %v677_v45 = vld [vmem:[%s2645_s24 + $0x10] sm:$0xff]  ;;  %s2674_s0 = sld [smem:[#allocation8_spill]]  ;;  %s2675_s4 = sld [smem:[#allocation9_spill]]  ;;  %vm1626_vm2 = vcmask 254976  }
  0x1d   :  { %1775 = vmatmul.mubr.msk.f32.vlgmr.msra.gmra.mrb[0].mxu1 %vm98_vm1, %v86_v19  ;;  %1923 = vmatpush3.bf16.msra.mxu0 %v1922_v20  ;;  %v1954_v42 = vpack.c.bf16 %v676_v41, %v675_v40  ;;  %v590_v43 = vld [vmem:[%s2643_s22] sm:$0xff]  ;;  %v591_v44 = vld [vmem:[%s2643_s22 + $0x8] sm:$0xff]  ;;  %v678_v47 = vld [vmem:[%s2645_s24 + $0x18] sm:$0xff]  ;;  %vm972_vm3 = vcmask 1041409   ;;  %vm975_vm4 = vcmask 58368  }
  0x1e   :  { %1929 = vmatpush3.bf16.msra.mxu1 %v1928_v21  ;;  %1924 = vmatprep.subr.bf16.mxu0 %v2094_v3  ;;  %v1945_v46 = vpack.c.bf16 %v591_v44, %v590_v43  ;;  %v592_v48 = vld [vmem:[%s2643_s22 + $0x10] sm:$0xff]  ;;  %v593_v49 = vld [vmem:[%s2643_s22 + $0x18] sm:$0xff]  ;;  %v1957_v50 = vpack.c.bf16 %v678_v47, %v677_v45  ;;  %v831_v52 = vld [vmem:[%s2638_s17] sm:$0xff] }
  0x1f   :  { %1930 = vmatprep.subr.bf16.mxu1 %v2094_v3  ;;  %1785 = vmatprep.mubr.msk.f32.mxu0 %vm2095_vm0, %v2096_v11  ;;  %v1949_v51 = vpack.c.bf16 %v593_v49, %v592_v48  ;;  %v832_v53 = vld [vmem:[%s2638_s17 + $0x8] sm:$0xff]  ;;  %v752_v55 = vld [vmem:[%s2637_s16] sm:$0xff]  ;;  %v833_v60 = vld [vmem:[%s2638_s17 + $0x10] sm:$0xff]  ;;  %v2097_v49 = vmov 1966171168  }
  0x20   :  { %1796 = vmatprep.mubr.msk.f32.mxu1 %vm2095_vm0, %v2096_v11  ;;  %v753_v56 = vld [vmem:[%s2637_s16 + $0x8] sm:$0xff]  ;;  %v1968_v58 = vpack.c.bf16 %v832_v53, %v831_v52  ;;  %v834_v61 = vld [vmem:[%s2638_s17 + $0x18] sm:$0xff]  ;;  %v754_v62 = vld [vmem:[%s2637_s16 + $0x10] sm:$0xff] }
  0x21   :  { %v421_v28 = vld [vmem:[%s2672_s27] sm:$0xff]  ;;  %v422_v29 = vld [vmem:[%s2672_s27 + $0x8] sm:$0xff]  ;;  %1926 = vmatpush3.bf16.msra.mxu0 %v1925_v26  ;;  %v423_v34 = vld [vmem:[%s2672_s27 + $0x10] sm:$0xff]  ;;  %v1959_v59 = vpack.c.bf16 %v753_v56, %v752_v55  ;;  %v1971_v1 = vpack.c.bf16 %v834_v61, %v833_v60 }
  0x22   :  { %v502_v30 = vld [vmem:[%s2673_s8] sm:$0xff]  ;;  %v503_v31 = vld [vmem:[%s2673_s8 + $0x8] sm:$0xff]  ;;  %v1934_v32 = vpack.c.bf16 %v422_v29, %v421_v28  ;;  %1932 = vmatpush3.bf16.msra.mxu1 %v1931_v27  ;;  %1933 = vmatprep.subr.bf16.mxu0 %v2094_v3  ;;  %v424_v35 = vld [vmem:[%s2672_s27 + $0x18] sm:$0xff] }
  0x23   :  { %v1940_v33 = vpack.c.bf16 %v503_v31, %v502_v30  ;;  %1939 = vmatprep.subr.bf16.mxu1 %v2094_v3  ;;  %v504_v36 = vld [vmem:[%s2673_s8 + $0x10] sm:$0xff]  ;;  %v505_v37 = vld [vmem:[%s2673_s8 + $0x18] sm:$0xff]  ;;  %v1937_v38 = vpack.c.bf16 %v424_v35, %v423_v34  ;;  %v2386_v54 = vld [vmem:[%s2674_s0] sm:$0xff] }
  0x24   :  { %1786 = vmatmul.mubr.msk.f32.vlgmr.msra.gmra.mrb[2].mxu0 %vm98_vm1, %v2283_v18  ;;  %v1943_v39 = vpack.c.bf16 %v505_v37, %v504_v36  ;;  %v88_v57 = vld [vmem:[%s2675_s4] sm:$0x3]  ;;  %v755_v63 = vld [vmem:[%s2637_s16 + $0x18] sm:$0xff]  ;;  %v2416_v0 = vld [vmem:[%s2674_s0 + $0x8] sm:$0xff] }
  0x25   :  { %1797 = vmatmul.mubr.msk.f32.vlgmr.msra.gmra.mrb[2].mxu1 %vm98_vm1, %v86_v19  ;;  %1935 = vmatpush3.bf16.msra.mxu0 %v1934_v32  ;;  %v1963_v2 = vpack.c.bf16 %v755_v63, %v754_v62  ;;  %v1658_v6 = vld [vmem:[%s2632_s11] ss:$0 sm:$0xff] }
  0x26   :  { %1941 = vmatpush3.bf16.msra.mxu1 %v1940_v33  ;;  %1936 = vmatprep.subr.bf16.mxu0 %v2094_v3  ;;  %v1662_v15 = vld [vmem:[%s2633_s12] ss:$0 sm:$0xff] }
  0x27   :  { %1942 = vmatprep.subr.bf16.mxu1 %v2094_v3  ;;  %1818 = vmatprep.mubr.msk.f32.mxu1 %vm2095_vm0, %v2096_v11  ;;  %v1666_v28 = vld [vmem:[%s2635_s14] ss:$0 sm:$0xff] }
  0x28   :  { %1807 = vmatprep.mubr.msk.f32.mxu0 %vm2095_vm0, %v2096_v11  ;;  %v1664_v31 = vld [vmem:[%s2634_s13] ss:$0 sm:$0xff] }
  0x29   :  { %1938 = vmatpush3.bf16.msra.mxu0 %v1937_v38 }
  0x2a   :  { %1944 = vmatpush3.bf16.msra.mxu1 %v1943_v39  ;;  %1946 = vmatprep.subr.bf16.mxu0 %v1945_v46 }
  0x2b   :  { %1953 = vmatprep.subr.bf16.mxu1 %v2094_v3 }
  0x2c   :  { %1808 = vmatmul.mubr.msk.f32.vlgmr.msra.gmra.mrb[4].mxu0 %vm98_vm1, %v86_v19 }
  0x2d   :  { %1819 = vmatmul.mubr.msk.f32.vlgmr.msra.gmra.mrb[4].mxu1 %vm98_vm1, %v2283_v18  ;;  %1948 = vmatpush3.bf16.msra.mxu0 %v1945_v46 }
  0x2e   :  { %1840 = vmatprep.mubr.msk.f32.mxu1 %vm2095_vm0, %v2096_v11  ;;  %1955 = vmatpush3.bf16.msra.mxu1 %v1954_v42 }
  0x2f   :  { %1956 = vmatprep.subr.bf16.mxu1 %v2094_v3  ;;  %1950 = vmatprep.subr.bf16.mxu0 %v1949_v51 }
  0x30   :  { %1829 = vmatprep.mubr.msk.f32.mxu0 %vm98_vm1, %v2386_v54 }
  0x31   :  { %1952 = vmatpush3.bf16.msra.mxu0 %v1949_v51 }
  0x32   :  { %1958 = vmatpush3.bf16.msra.mxu1 %v1957_v50  ;;  %1960 = vmatprep.subr.bf16.mxu0 %v1959_v59  ;;  %v910_v50 = vunpack.c.l.s4 %v2097_v49 }
  0x33   :  { %1967 = vmatprep.subr.bf16.mxu1 %v2094_v3 }
  0x34   :  { %1830 = vmatmul.mubr.msk.f32.vlgmr.msra.gmra.mrb[6].mxu0 %vm98_vm1, %v2416_v0  ;;  %v911_v51 = vunpack.c.0.s8 %v910_v50  ;;  %v1059_v50 = vld [vmem:[%s2644_s23 + $0x10] sm:$0xff] }
  0x35   :  { %1841 = vmatmul.mubr.msk.f32.vlgmr.msra.gmra.mrb[6].mxu1 %vm98_vm1, %v88_v57  ;;  %1962 = vmatpush3.bf16.msra.mxu0 %v1959_v59 }
  0x36   :  { %1969 = vmatpush3.bf16.msra.mxu1 %v1968_v58  ;;  %1862 = vmatprep.mubr.msk.f32.mxu1 %vm2095_vm0, %v2096_v11 }
  0x37   :  { %1970 = vmatprep.subr.bf16.mxu1 %v2094_v3  ;;  %1964 = vmatprep.subr.bf16.mxu0 %v1963_v2 }
  0x38   :  { %1851 = vmatprep.mubr.msk.f32.mxu0 %vm98_vm1, %v2386_v54 }
  0x39   :  { %1966 = vmatpush3.bf16.msra.mxu0 %v1963_v2 }
  0x3a   :  { %1972 = vmatpush3.bf16.msra.mxu1 %v1971_v1  ;;  %1973 = vmatprep.subr.bf16.mxu0 %v2094_v3 }
  0x3c   :  { %1852 = vmatmul.mubr.msk.f32.vlgmr.msra.gmra.mrb[8].mxu0 %vm98_vm1, %v2416_v0 }
  0x3d   :  { %1873 = vmatprep.mubr.msk.f32.mxu0 %vm2095_vm0, %v2096_v11 }
  0xef   :  { %v168_v4 = vpop.f32.mrb[0].mxu0 }
  0xf0   :  { %v241_v5 = vpop.f32.mrb[0].mxu1  ;;  %v1765_v7 = vpop.f32.mrb[1].mxu0 }
  0xf1   :  { %v242_v8 = vadd.f32 %v241_v5, %v168_v4  ;;  %v1776_v9 = vpop.f32.mrb[1].mxu1  ;;  %v1674_v4 = vld [vmem:[%s2636_s15] ss:$0 sm:$0xff]  ;;  %s2676_s15 = sld [smem:[#allocation11_spill]] }
  0xf3   :  { %v252_v10 = vadd.f32 %v1658_v6, %v242_v8 }
  0xf5   :  { %v1659_v12 = vmul.f32 -1.442695, %v252_v10 }
  0xf7   :  { %2008 = vpow2.f32 %v1659_v12  ;;  %v333_v13 = vpop.f32.mrb[2].mxu0 }
  0xf8   :  { %v403_v14 = vpop.f32.mrb[2].mxu1  ;;  %v1787_v16 = vpop.f32.mrb[3].mxu0 }
  0xf9   :  { %v404_v17 = vadd.f32 %v403_v14, %v333_v13  ;;  %v1798_v19 = vpop.f32.mrb[3].mxu1 }
  0xfb   :  { %v414_v20 = vadd.f32 %v1662_v15, %v404_v17 }
  0xfd   :  { %v1663_v21 = vmul.f32 -1.442695, %v414_v20 }
  0xff   :  { %2010 = vpow2.f32 %v1663_v21  ;;  %v498_v22 = vpop.f32.mrb[4].mxu0  ;;  %v2098_v21 = vmov 0  }
 0x100   :  { %v579_v23 = vpop.f32.mrb[4].mxu1  ;;  %v1809_v24 = vpop.f32.mrb[5].mxu0  ;;  %v499_v33 = vadd.f32 %v1664_v31, %v498_v22  ;;  %2007 = vset.pattern.permute.xlu0 %v2098_v21  ;;  %2006 = vset.pattern.permute.xlu1 %v2098_v21 }
 0x101   :  { %v2009_v25 = vpop.eup %2008  ;;  %v1820_v26 = vpop.f32.mrb[5].mxu1  ;;  %v580_v32 = vadd.f32 %v1666_v28, %v579_v23 }
 0x102   :  { %v256_v27 = vadd.f32 1.0, %v2009_v25 }
 0x104   :  { %2012 = vrcp.f32 %v256_v27 }
 0x107   :  { %v2448_v45 = vpop.f32.mrb[6].mxu0 }
 0x108   :  { %v2446_v43 = vpop.f32.mrb[6].mxu1  ;;  %v2450_v46 = vpop.f32.mrb[7].mxu0 }
 0x109   :  { %v2011_v29 = vpop.eup %2010  ;;  %v1842_v44 = vpop.f32.mrb[7].mxu1 }
 0x10a   :  { %v418_v30 = vadd.f32 1.0, %v2011_v29 }
 0x10c   :  { %2014 = vrcp.f32 %v418_v30 }
 0x10e   :  { %v2013_v34 = vpop.eup %2012 }
 0x10f   :  { %v583_v35 = vmul.f32 %v2013_v34, %v580_v32  ;;  %v1853_v47 = vpop.f32.mrb[8].mxu0 }
 0x110   :  { %v822_v48 = vpop.f32.mrb[9].mxu0 }
 0x111   :  { %v584_v36 = vadd.f32 %v583_v35, %v499_v33 }
 0x113   :  { %2016 = vtanh.f32 %v584_v36 }
 0x116   :  { %v2015_v37 = vpop.eup %2014 }
 0x117   :  { %v586_v38 = vsub.f32 1.0, %v2015_v37  ;;  %v588_v41 = vmul.f32 %v2015_v37, %v2283_v18  ;;  %v912_v18 = vlaneseq }
 0x119   :  { %v913_v52 = vshrl.u32 %v912_v18, 7  ;;  %v963_v12 = vand.u32 127, %v912_v18  ;;  %v1060_v18 = vld [vmem:[%s2644_s23 + $0x18] sm:$0xff] }
 0x11b   :  { %v2452_v53 = vsub.s32 %v911_v51, %v913_v52  ;;  %v2455_v58 = vsub.s32 0, %v913_v52  ;;  %v2466_v14 = vsub.s32 %v963_v12, %v913_v52  ;;  %v2472_v22 = vsub.s32 1, %v913_v52  ;;  %v1188_v52 = vld [vmem:[%s2640_s19] sm:$0xff] }
 0x11c   :  { %v1977_v51 = vpack.c.bf16 %v1060_v18, %v1059_v50 }
 0x11d   :  { %v2017_v39 = vpop.eup %2016 }
 0x11e   :  { %v587_v40 = vmul.f32 %v2017_v39, %v586_v38 }
 0x120   :  { %v589_v42 = vadd.f32 %v588_v41, %v587_v40 }
 0x122   :  { %1863 = vmatmul.mubr.msk.f32.vlgmr.msra.gmra.mrb[8].mxu1 %vm98_vm1, %v589_v42  ;;  %1627 = vst.msk [vmem:[#allocation4] sm:$0x3] %vm1626_vm2, %v589_v42 }
 0x123   :  { %1884 = vmatprep.mubr.msk.f32.mxu1 %vm98_vm1, %v2386_v54 }
 0x1f5   :  { %v904_v55 = vpop.f32.mrb[8].mxu1 }
 0x1f6   :  { %v915_v56 = vrot.slane %v904_v55, %v2452_v53  ;;  %v1864_v57 = vpop.f32.mrb[9].mxu1  ;;  %v1189_v55 = vld [vmem:[%s2640_s19 + $0x8] sm:$0xff] }
 0x1f7   :  { %v1190_v57 = vld [vmem:[%s2640_s19 + $0x10] sm:$0xff] }
 0x1f8   :  { %v916_v59 = vcombine.high %v915_v56, %v915_v56  ;;  %v923_v60 = vrot.slane %v915_v56, %v2452_v53  ;;  %v1979_v56 = vpack.c.bf16 %v1189_v55, %v1188_v52  ;;  %v1680_v52 = vld [vmem:[%s2639_s18] ss:$0 sm:$0xff] }
 0x1fa   :  { %v930_v61 = vrot.slane %v916_v59, %v2452_v53  ;;  %v934_v62 = vrot.slane %v923_v60, %v2455_v58  ;;  %1980 = vmatprep.subr.bf16.mxu1 %v1979_v56  ;;  %v1191_v59 = vld [vmem:[%s2640_s19 + $0x18] sm:$0xff] }
 0x1fb   :  { %1982 = vmatpush3.bf16.msra.mxu1 %v1979_v56  ;;  %v1983_v60 = vpack.c.bf16 %v1191_v59, %v1190_v57 }
 0x1fc   :  { %v938_v63 = vrot.slane %v930_v61, %v2455_v58  ;;  %v941_v1 = vadd.f32 %v934_v62, %v822_v48  ;;  %v1058_v48 = vld [vmem:[%s2644_s23 + $0x8] sm:$0xff] }
 0x1fd   :  { %1984 = vmatprep.subr.bf16.mxu1 %v1983_v60 }
 0x1fe   :  { %v942_v2 = vadd.f32 %v1853_v47, %v938_v63  ;;  %2018 = vtanh.f32 %v941_v1  ;;  %v1057_v47 = vld [vmem:[%s2644_s23] sm:$0xff] }
 0x1ff   :  { %v1974_v49 = vpack.c.bf16 %v1058_v48, %v1057_v47  ;;  %1986 = vmatpush3.bf16.msra.mxu1 %v1983_v60 }
 0x200   :  { %2020 = vtanh.f32 %v942_v2  ;;  %1993 = vmatprep.subr.bf16.mxu1 %v2094_v3 }
 0x201   :  { %1975 = vmatpush3.bf16.msra.mxu0 %v1974_v49 }
 0x202   :  { %1976 = vmatprep.subr.bf16.mxu0 %v2094_v3  ;;  %1885 = vmatmul.mubr.msk.f32.vlgmr.msra.gmra.mrb[10].mxu1 %vm98_vm1, %v2416_v0 }
 0x203   :  { %1995 = vmatpush3.bf16.msra.mxu1 %v1974_v49  ;;  %1906 = vmatprep.mubr.msk.f32.mxu1 %vm2095_vm0, %v2096_v11 }
 0x204   :  { %1996 = vmatprep.subr.bf16.mxu1 %v2094_v3 }
 0x205   :  { %1978 = vmatpush3.bf16.msra.mxu0 %v1977_v51 }
 0x206   :  { %1987 = vmatprep.subr.bf16.mxu0 %v2094_v3 }
 0x207   :  { %1998 = vmatpush3.bf16.msra.mxu1 %v1977_v51 }
 0x208   :  { %v2019_v5 = vpop.eup %2018 }
 0x209   :  { %v952_v6 = vmul.f32 %v2019_v5, %v1674_v4 }
 0x20a   :  { %v2021_v7 = vpop.eup %2020 }
 0x20b   :  { %v954_v8 = vsel %vm98_vm1, %v952_v6, 0.0  ;;  %v953_v9 = vmul.f32 %v2021_v7, %v1674_v4 }
 0x20c   :  { %955 = vadd.xlane.f32.xlu0 %v954_v8 }
 0x20d   :  { %v957_v10 = vsel %vm98_vm1, %v953_v9, 0.0 }
 0x210   :  { %958 = vadd.xlane.f32.xlu0 %v957_v10 }
 0x299   :  { %v956_v13 = vpop.xlane.xlu0 %955 }
 0x29a   :  { %v967_v16 = vrot.slane %v956_v13, %v2466_v14 }
 0x29d   :  { %v959_v15 = vpop.xlane.xlu0 %958 }
 0x29e   :  { %v971_v17 = vrot.slane %v959_v15, %v2466_v14 }
 0x2a0   :  { %v973_v19 = vsel %vm972_vm3, %v971_v17, %v967_v16  ;;  %v1267_v16 = vld [vmem:[%s2641_s20] sm:$0xff]  ;;  %v1268_v17 = vld [vmem:[%s2641_s20 + $0x8] sm:$0xff] }
 0x2a1   :  { %v976_v20 = vsel %vm975_vm4, %v973_v19, -inf }
 0x2a2   :  { %977 = vmax.xlane.f32.xlu1 %v976_v20 }
 0x32f   :  { %v978_v23 = vpop.xlane.xlu1 %977 }
 0x330   :  { %v983_v24 = vrot.slane %v978_v23, %v2455_v58  ;;  %v987_v25 = vrot.slane %v978_v23, %v2472_v22  ;;  %v1988_v23 = vpack.c.bf16 %v1268_v17, %v1267_v16 }
 0x332   :  { %v990_v26 = vsub.f32 %v956_v13, %v983_v24  ;;  %v991_v27 = vsub.f32 %v959_v15, %v987_v25  ;;  %v1269_v24 = vld [vmem:[%s2641_s20 + $0x10] sm:$0xff]  ;;  %v1270_v25 = vld [vmem:[%s2641_s20 + $0x18] sm:$0xff] }
 0x334   :  { %v992_v28 = vmul.f32 1.442695, %v990_v26  ;;  %v994_v29 = vmul.f32 1.442695, %v991_v27  ;;  %v1991_v27 = vpack.c.bf16 %v1270_v25, %v1269_v24  ;;  %v1676_v25 = vld [vmem:[%s2642_s21] ss:$0 sm:$0xff] }
 0x335   :  { %s2099_s21 = smov [#allocation4]  }
 0x336   :  { %2022 = vpow2.f32 %v992_v28  ;;  %v89_v28 = vld [vmem:[%s2676_s15] sm:$0x3]  ;;  %s1644_s4 = sshll.u32 %s2099_s21, 4  ;;  %s1645_s4 = int_to_ptr.vmem [resolvable:$true] %s1644_s4 }
 0x337   :  { %2024 = vpow2.f32 %v994_v29  ;;  %v1886_v29 = vpop.f32.mrb[10].mxu1  ;;  %s2046_s1 = scalar_lea.vmem %s1645_s4, 32  ;;  %p2051_p1 = scmp.lt.s32.totalorder %s1645_s4, %s1645_s4 }
 0x338   :  { %p2047_p0 = scmp.ne.s32.totalorder %s1645_s4, %s2046_s1  ;;  %p2052_p2 = scmp.lt.s32.totalorder %s2046_s1, %s2046_s1 }
 0x33a   :  { %p2053_p3 = por %p2052_p2, %p2051_p1 }
 0x33c   :  { %p2054_p4 = pnand %p2053_p3, %p2047_p0 }
 0x340   :  { %v2023_v30 = vpop.eup %2022 }
 0x341   :  { %v2025_v31 = vpop.eup %2024  ;;  %999 = vperm.xlu1 %2006, %v2023_v30  }
 0x342   :  { %1002 = vperm.xlu0 %2007, %v2025_v31  }
 0x3c0   :  { %v1000_v32 = vpop.permute.xlu1 %999 }
 0x3c1   :  { %v1003_v33 = vpop.permute.xlu0 %1002  ;;  %v1007_v34 = vrot.slane %v1000_v32, %v2466_v14 }
 0x3c2   :  { %v1011_v35 = vrot.slane %v1003_v33, %v2466_v14 }
 0x3c4   :  { %v1012_v36 = vsel %vm972_vm3, %v1011_v35, %v1007_v34 }
 0x3c5   :  { %v1014_v37 = vsel %vm975_vm4, %v1012_v36, 0.0 }
 0x3c6   :  { %1015 = vadd.xlane.f32.xlu1 %v1014_v37 }
 0x453   :  { %v1016_v38 = vpop.xlane.xlu1 %1015 }
 0x454   :  { %2026 = vrcp.f32 %v1016_v38 }
 0x45e   :  { %v2027_v39 = vpop.eup %2026 }
 0x45f   :  { %v1022_v40 = vrot.slane %v2027_v39, %v2455_v58  ;;  %v1026_v42 = vrot.slane %v2027_v39, %v2472_v22 }
 0x461   :  { %v1029_v41 = vmul.f32 %v2023_v30, %v1022_v40  ;;  %v1030_v44 = vmul.f32 %v2025_v31, %v1026_v42  ;;  %v1258_v30 = vpop.f32.mrb[11].mxu1 }
 0x463   :  { %1033 = vperm.xlu0 %2007, %v1029_v41  }
 0x467   :  { %1038 = vperm.xlu0 %2007, %v1030_v44  }
 0x4e2   :  { %v1034_v61 = vpop.permute.xlu0 %1033 }
 0x4e3   :  { %v1041_v62 = vmul.f32 %v1034_v61, %v2386_v54 }
 0x4e5   :  { %v1043_v63 = vsel %vm98_vm1, %v1041_v62, 0.0 }
 0x4e6   :  { %v1044_v1 = vrot.slane %v1043_v63, 4  ;;  %v1039_v2 = vpop.permute.xlu0 %1038 }
 0x4e7   :  { %v1042_v4 = vmul.f32 %v1039_v2, %v2416_v0 }
 0x4e8   :  { %v1045_v5 = vadd.f32 %v1044_v1, %v1043_v63 }
 0x4e9   :  { %v1050_v6 = vsel %vm98_vm1, %v1042_v4, 0.0 }
 0x4ea   :  { %v1046_v7 = vrot.slane %v1045_v5, 2  ;;  %v1051_v8 = vrot.slane %v1050_v6, 4 }
 0x4ec   :  { %v1047_v9 = vadd.f32 %v1046_v7, %v1045_v5  ;;  %v1052_v10 = vadd.f32 %v1051_v8, %v1050_v6 }
 0x4ee   :  { %v1053_v12 = vrot.slane %v1052_v10, 2  ;;  %v1048_v13 = vrot.slane %v1047_v9, 1 }
 0x4f0   :  { %v1054_v15 = vadd.f32 %v1053_v12, %v1052_v10  ;;  %v1049_v20 = vadd.f32 %v1048_v13, %v1047_v9 }
 0x4f2   :  { %v1055_v19 = vrot.slane %v1054_v15, 1 }
 0x4f4   :  { %v1056_v21 = vadd.f32 %v1055_v19, %v1054_v15 }
 0x4f6   :  { %v1063_v26 = vsel %vm972_vm3, %v1056_v21, %v1049_v20 }
 0x4f7   :  { %1874 = vmatmul.mubr.msk.f32.vlgmr.msra.gmra.mrb[10].mxu0 %vm98_vm1, %v1063_v26 }
 0x4f8   :  { %1989 = vmatpush3.bf16.msra.mxu0 %v1988_v23  ;;  %1895 = vmatprep.mubr.msk.f32.mxu0 %vm2095_vm0, %v2096_v11 }
 0x4f9   :  { %1990 = vmatprep.subr.bf16.mxu0 %v2094_v3 }
 0x4fc   :  { %1992 = vmatpush3.bf16.msra.mxu0 %v1991_v27 }
 0x4ff   :  { %1896 = vmatmul.mubr.msk.f32.vlgmr.msra.gmra.mrb[12].mxu0 %vm98_vm1, %v89_v28 }
 0x5ca   :  { %v1132_v31 = vpop.f32.mrb[10].mxu0 }
 0x5cb   :  { %v1133_v32 = vadd.f32 %v1132_v31, %v2446_v43  ;;  %v1875_v33 = vpop.f32.mrb[11].mxu0 }
 0x5cd   :  { %v1143_v34 = vrot.slane %v1133_v32, %v2452_v53 }
 0x5cf   :  { %v1144_v35 = vcombine.high %v1143_v34, %v1143_v34  ;;  %v1151_v11 = vrot.slane %v1143_v34, %v2452_v53 }
 0x5d1   :  { %v1158_v3 = vrot.slane %v1144_v35, %v2452_v53  ;;  %v1162_v36 = vrot.slane %v1151_v11, %v2455_v58 }
 0x5d2   :  { %v1340_v37 = vpop.f32.mrb[12].mxu0 }
 0x5d3   :  { %v1166_v38 = vrot.slane %v1158_v3, %v2455_v58  ;;  %v2546_v39 = vadd.f32 %v1162_v36, %v2450_v46  ;;  %v1351_v40 = vrot.slane %v1340_v37, %v2452_v53  ;;  %v1897_v41 = vpop.f32.mrb[13].mxu0 }
 0x5d5   :  { %v1170_v42 = vadd.f32 %v2448_v45, %v1166_v38  ;;  %v1352_v44 = vcombine.high %v1351_v40, %v1351_v40  ;;  %v1359_v47 = vrot.slane %v1351_v40, %v2452_v53 }
 0x5d7   :  { %v1366_v48 = vrot.slane %v1352_v44, %v2452_v53  ;;  %v1370_v49 = vrot.slane %v1359_v47, %v2455_v58 }
 0x5d9   :  { %v1374_v50 = vrot.slane %v1366_v48, %v2455_v58  ;;  %v1377_v18 = vadd.f32 %v1370_v49, %v1258_v30 }
 0x5db   :  { %v1378_v51 = vadd.f32 %v1886_v29, %v1374_v50  ;;  %2028 = vtanh.f32 %v1377_v18 }
 0x5dd   :  { %2030 = vtanh.f32 %v1378_v51 }
 0x5e5   :  { %v2029_v55 = vpop.eup %2028 }
 0x5e6   :  { %v1388_v56 = vmul.f32 %v2029_v55, %v1680_v52 }
 0x5e7   :  { %v2031_v57 = vpop.eup %2030 }
 0x5e8   :  { %v1390_v59 = vsel %vm98_vm1, %v1388_v56, 0.0  ;;  %v1389_v60 = vmul.f32 %v2031_v57, %v1680_v52 }
 0x5e9   :  { %1391 = vadd.xlane.f32.xlu1 %v1390_v59 }
 0x5ea   :  { %v1393_v61 = vsel %vm98_vm1, %v1389_v60, 0.0 }
 0x5eb   :  { %1394 = vadd.xlane.f32.xlu0 %v1393_v61 }
 0x676   :  { %v1392_v62 = vpop.xlane.xlu1 %1391 }
 0x677   :  { %v1401_v1 = vrot.slane %v1392_v62, %v2466_v14 }
 0x678   :  { %v1395_v63 = vpop.xlane.xlu0 %1394 }
 0x679   :  { %v1405_v2 = vrot.slane %v1395_v63, %v2466_v14 }
 0x67b   :  { %v1406_v4 = vsel %vm972_vm3, %v1405_v2, %v1401_v1 }
 0x67c   :  { %v1408_v5 = vsel %vm975_vm4, %v1406_v4, -inf }
 0x67d   :  { %1409 = vmax.xlane.f32.xlu1 %v1408_v5 }
 0x70a   :  { %v1410_v6 = vpop.xlane.xlu1 %1409 }
 0x70b   :  { %v1415_v7 = vrot.slane %v1410_v6, %v2455_v58  ;;  %v1419_v8 = vrot.slane %v1410_v6, %v2472_v22 }
 0x70d   :  { %v1422_v9 = vsub.f32 %v1392_v62, %v1415_v7  ;;  %v1423_v10 = vsub.f32 %v1395_v63, %v1419_v8 }
 0x70f   :  { %v1424_v12 = vmul.f32 1.442695, %v1422_v9  ;;  %v1426_v13 = vmul.f32 1.442695, %v1423_v10 }
 0x711   :  { %2032 = vpow2.f32 %v1424_v12 }
 0x712   :  { %2034 = vpow2.f32 %v1426_v13 }
 0x713   :  { %2036 = vtanh.f32 %v1170_v42 }
 0x71b   :  { %v2033_v15 = vpop.eup %2032 }
 0x71c   :  { %1431 = vperm.xlu1 %2006, %v2033_v15   ;;  %v2035_v16 = vpop.eup %2034 }
 0x71d   :  { %v2037_v20 = vpop.eup %2036 }
 0x71e   :  { %v1181_v27 = vmul.f32 %v2037_v20, %v1676_v25 }
 0x720   :  { %1434 = vperm.xlu1 %2006, %v2035_v16   ;;  %v1185_v28 = vsel %vm98_vm1, %v1181_v27, 0.0 }
 0x79b   :  { %v1432_v17 = vpop.permute.xlu1 %1431 }
 0x79c   :  { %v1439_v21 = vrot.slane %v1432_v17, %v2466_v14 }
 0x79f   :  { %v1435_v19 = vpop.permute.xlu1 %1434 }
 0x7a0   :  { %v1443_v23 = vrot.slane %v1435_v19, %v2466_v14 }
 0x7a2   :  { %v1444_v24 = vsel %vm972_vm3, %v1443_v23, %v1439_v21 }
 0x7a3   :  { %v1446_v26 = vsel %vm975_vm4, %v1444_v24, 0.0 }
 0x7a4   :  { %1447 = vadd.xlane.f32.xlu1 %v1446_v26 }
 0x7a8   :  { %1186 = vadd.xlane.f32.xlu1 %v1185_v28 }
 0x831   :  { %v1448_v29 = vpop.xlane.xlu1 %1447 }
 0x832   :  { %2038 = vrcp.f32 %v1448_v29 }
 0x833   :  { %2040 = vtanh.f32 %v2546_v39 }
 0x83c   :  { %v2039_v30 = vpop.eup %2038 }
 0x83d   :  { %v1454_v31 = vrot.slane %v2039_v30, %v2455_v58  ;;  %v1458_v33 = vrot.slane %v2039_v30, %v2472_v22  ;;  %v2041_v35 = vpop.eup %2040 }
 0x83e   :  { %v1180_v11 = vmul.f32 %v2041_v35, %v1676_v25 }
 0x83f   :  { %v1461_v32 = vmul.f32 %v2033_v15, %v1454_v31  ;;  %v1462_v34 = vmul.f32 %v2035_v16, %v1458_v33 }
 0x840   :  { %v1182_v3 = vsel %vm98_vm1, %v1180_v11, 0.0 }
 0x841   :  { %1465 = vperm.xlu0 %2007, %v1461_v32  }
 0x845   :  { %1470 = vperm.xlu0 %2007, %v1462_v34  }
 0x864   :  { %1183 = vadd.xlane.f32.xlu0 %v1182_v3 }
 0x8c0   :  { %v1466_v36 = vpop.permute.xlu0 %1465 }
 0x8c1   :  { %v1473_v37 = vmul.f32 %v1466_v36, %v2386_v54 }
 0x8c3   :  { %v1475_v38 = vsel %vm98_vm1, %v1473_v37, 0.0 }
 0x8c4   :  { %v1476_v40 = vrot.slane %v1475_v38, 4  ;;  %v1471_v41 = vpop.permute.xlu0 %1470 }
 0x8c5   :  { %v1474_v42 = vmul.f32 %v1471_v41, %v2416_v0 }
 0x8c6   :  { %v1477_v22 = vadd.f32 %v1476_v40, %v1475_v38 }
 0x8c7   :  { %v1482_v44 = vsel %vm98_vm1, %v1474_v42, 0.0 }
 0x8c8   :  { %v1478_v47 = vrot.slane %v1477_v22, 2  ;;  %v1483_v48 = vrot.slane %v1482_v44, 4 }
 0x8ca   :  { %v1479_v39 = vadd.f32 %v1478_v47, %v1477_v22  ;;  %v1484_v49 = vadd.f32 %v1483_v48, %v1482_v44 }
 0x8cc   :  { %v1485_v50 = vrot.slane %v1484_v49, 2  ;;  %v1480_v18 = vrot.slane %v1479_v39, 1 }
 0x8ce   :  { %v1486_v51 = vadd.f32 %v1485_v50, %v1484_v49  ;;  %v1481_v55 = vadd.f32 %v1480_v18, %v1479_v39 }
 0x8d0   :  { %v1487_v52 = vrot.slane %v1486_v51, 1 }
 0x8d2   :  { %v1488_v56 = vadd.f32 %v1487_v52, %v1486_v51 }
 0x8d4   :  { %v1491_v54 = vsel %vm972_vm3, %v1488_v56, %v1481_v55 }
 0x8d5   :  { %1907 = vmatmul.mubr.msk.f32.vlgmr.msra.gmra.mrb[12].mxu1 %vm98_vm1, %v1491_v54 }
 0x9a8   :  { %v1560_v57 = vpop.f32.mrb[12].mxu1 }
 0x9a9   :  { %v1561_v0 = vadd.f32 %v1560_v57, %v2446_v43  ;;  %v1908_v59 = vpop.f32.mrb[13].mxu1 }
 0x9ab   :  { %v1571_v60 = vrot.slane %v1561_v0, %v2452_v53 }
 0x9ad   :  { %v1572_v61 = vcombine.high %v1571_v60, %v1571_v60  ;;  %v1579_v62 = vrot.slane %v1571_v60, %v2452_v53 }
 0x9af   :  { %v1586_v63 = vrot.slane %v1572_v61, %v2452_v53  ;;  %v1590_v1 = vrot.slane %v1579_v62, %v2455_v58 }
 0x9b1   :  { %v1594_v2 = vrot.slane %v1586_v63, %v2455_v58  ;;  %v1597_v4 = vadd.f32 %v1590_v1, %v2450_v46 }
 0x9b3   :  { %v1598_v5 = vadd.f32 %v2448_v45, %v1594_v2  ;;  %2042 = vtanh.f32 %v1597_v4 }
 0x9b5   :  { %2044 = vtanh.f32 %v1598_v5 }
 0x9bd   :  { %v2043_v6 = vpop.eup %2042 }
 0x9be   :  { %v1601_v43 = vmul.f32 %v2043_v6, %v1676_v25 }
 0x9bf   :  { %v2045_v7 = vpop.eup %2044 }
 0x9c0   :  { %v1603_v8 = vsel %vm98_vm1, %v1601_v43, 0.0  ;;  %v1602_v9 = vmul.f32 %v2045_v7, %v1676_v25 }
 0x9c1   :  { %1604 = vadd.xlane.f32.xlu1 %v1603_v8 }
 0x9c2   :  { %v1606_v10 = vsel %vm98_vm1, %v1602_v9, 0.0 }
 0x9c5   :  { %1607 = vadd.xlane.f32.xlu1 %v1606_v10 }
 0x9c6   :  { %2057 = shalt.err (!%p2054_p4)
}
 0x9c7   :  { %s2058_s28 = scalar_lea.hbm %s2647_s26, 32 }
 0x9c8   :  { %p2059_p5 = scmp.ne.s32.totalorder %s2647_s26, %s2058_s28  ;;  %p2062_p6 = scmp.lt.u32.totalorder %s2058_s28, %s2647_s26 }
 0x9ca   :  { %p2064_p7 = pnand %p2062_p6, %p2059_p5 }
 0x9cc   :  { %2067 = shalt.err (!%p2064_p7)
}
 0x9cd   :  { %1647 = dma.vmem_to_hbm [thread:$0]  %s1645_s4, 32, %s2647_s26, [#allocation5]   ;;  %v1187_v45 = vpop.xlane.xlu1 %1186  ;;  %v1184_v46 = vpop.xlane.xlu0 %1183 }
 0x9ce   :  { %v1609_v58 = vmul.f32 5.0, %v1184_v46  ;;  %v1610_v12 = vmul.f32 5.0, %v1187_v45  ;;  %s2100_s23 = smov [#allocation2]  }
 0x9cf   :  { %s1634_s16 = sshll.u32 %s2100_s23, 4  ;;  %s1635_s16 = int_to_ptr.vmem [resolvable:$true] %s1634_s16 }
 0x9d0   :  { %s2068_s26 = scalar_lea.vmem %s1635_s16, 32  ;;  %p2073_p9 = scmp.lt.s32.totalorder %s1635_s16, %s1635_s16 }
 0x9d1   :  { %p2069_p8 = scmp.ne.s32.totalorder %s1635_s16, %s2068_s26  ;;  %p2074_p10 = scmp.lt.s32.totalorder %s2068_s26, %s2068_s26 }
 0x9d3   :  { %p2075_p11 = por %p2074_p10, %p2073_p9 }
 0x9d5   :  { %p2076_p12 = pnand %p2075_p11, %p2069_p8 }
 0xa4e   :  { %v1605_v53 = vpop.xlane.xlu1 %1604 }
 0xa4f   :  { %v1611_v13 = vadd.f32 %v1609_v58, %v1605_v53 }
 0xa51   :  { %v1618_v17 = vrot.slane %v1611_v13, %v2466_v14 }
 0xa52   :  { %v1608_v15 = vpop.xlane.xlu1 %1607 }
 0xa53   :  { %v1612_v16 = vadd.f32 %v1610_v12, %v1608_v15 }
 0xa55   :  { %v1622_v19 = vrot.slane %v1612_v16, %v2466_v14 }
 0xa57   :  { %v1623_v20 = vsel %vm972_vm3, %v1622_v19, %v1618_v17 }
 0xa58   :  { %1625 = vst.msk [vmem:[#allocation2] sm:$0x3] %vm975_vm4, %v1623_v20 }
 0xa59   :  { %2079 = shalt.err (!%p2076_p12)
}
 0xa5a   :  { %s2080_s0 = scalar_lea.hbm %s2646_s25, 32 }
 0xa5b   :  { %p2081_p13 = scmp.ne.s32.totalorder %s2646_s25, %s2080_s0  ;;  %p2084_p0 = scmp.lt.u32.totalorder %s2080_s0, %s2646_s25 }
 0xa5d   :  { %p2086_p1 = pnand %p2084_p0, %p2081_p13 }
 0xa5f   :  { %2089 = shalt.err (!%p2086_p1)
}
 0xa60   :  { %1637 = dma.vmem_to_hbm [thread:$0]  %s1635_s16, 32, %s2646_s25, [#allocation3]  }
 0xa61   :  { %2090 = dma.done.wait [#allocation3], 32  }
 0xa62   :  { %2091 = vsyncadd [#allocation3], 4294967264 }
 0xa63   :  { %2092 = dma.done.wait [#allocation5], 32  }
 0xa64   :  { %2093 = vsyncadd [#allocation5], 4294967264 }
 0xa65   :  { %1654 = vsyncpa [#allocation3], 1 }
 0xa66   :  { %1655 = vsyncpa [#allocation5], 1 }

</bundles_post_ra>
